<compile_context>
chip_gen: v7x
topology: tpu7x:2x2x1
jax: 0.10.0
libtpu: 0.0.40
codegen_flags: <defaults>
</compile_context>

<pallas_src>
import math
import functools

import jax
import jax.numpy as jnp
from jax import lax
from jax.experimental import pallas as pl
from jax.experimental.pallas import tpu as pltpu

LN_EPS = 1e-5
_SQRT2 = math.sqrt(2.0)
_HIGHEST = jax.lax.Precision.HIGHEST  # reference only


def _round_up(n, m):
    return ((n + m - 1) // m) * m


def _gelu_exact(z):
    # PyTorch nn.GELU() default: exact erf formulation.
    # TODO(synk): z is lane-sparse ((TM, rank=4), 4/128 useful lanes); repack
    # lane-dense only if VALU/EUP ever becomes the critical slot.
    return 0.5 * z * (1.0 + lax.erf(z / _SQRT2))


def _deltawonorm_kernel(x_ref, wp_ref, bp_ref, w1_ref, w2_ref,
                        gamma_ref, beta_ref, wc1_ref, bc1_ref,
                        wc2_ref, bc2_ref, o_ref):
    # x_ref: (TM, IN) bf16; wp_ref: (IN, HID) bf16; bp_ref: (1, HID) f32
    # w1_ref: (TOT, HID, R) f32; w2_ref: (TOT, R, HID) f32
    # gamma/beta: (1, HID); wc1: (HID, 64); bc1: (1, 64); wc2: (64, NC); bc2: (1, NC)
    x = x_ref[...]

    # feature_proj: Linear + ReLU (Dropout is identity in eval mode).
    # DEFAULT precision: single bf16 MXU pass, f32 accumulation.
    h = jnp.dot(x, wp_ref[...], preferred_element_type=jnp.float32) + bp_ref[...]
    h = jnp.maximum(h, 0.0)

    # num_layers * steps sequential low-rank delta updates (DeltaProductBlockNoNorm).
    tot, _, rank = w1_ref.shape
    for s in range(tot):
        # Down-projection (K=HID, N=rank): keep on the MXU at DEFAULT precision.
        z = jnp.dot(h, w1_ref[s], preferred_element_type=jnp.float32)
        z = _gelu_exact(z)
        # Up-projection has K=rank=4: do it as rank-1 broadcast-FMAs on the VPU
        # (exact f32) instead of a <2%-utilized MXU matmul.
        w2_s = w2_ref[s]                      # (R, HID) f32
        for r in range(rank):
            h = h + z[:, r:r + 1] * w2_s[r:r + 1, :]
    # TODO(synk): training-mode dropout (pltpu.prng_seed / prng_random_bits with a
    # grid-dependent seed) not implemented; eval path only.

    # classifier: LayerNorm -> Linear(64) -> ReLU -> Dropout -> Linear(num_classes).
    mean = jnp.mean(h, axis=-1, keepdims=True)
    c = h - mean
    var = jnp.mean(c * c, axis=-1, keepdims=True)
    hn = c * lax.rsqrt(var + LN_EPS) * gamma_ref[...] + beta_ref[...]

    z1 = jnp.dot(hn, wc1_ref[...], preferred_element_type=jnp.float32) + bc1_ref[...]
    z1 = jnp.maximum(z1, 0.0)
    logits = jnp.dot(z1, wc2_ref[...], preferred_element_type=jnp.float32) + bc2_ref[...]
    o_ref[...] = logits.astype(o_ref.dtype)


def deltawonorm_forward(x, w_proj, b_proj, w1_all, w2_all, gamma, beta,
                        w_c1, b_c1, w_c2, b_c2, *, tile_rows=1024):
    """x: (batch, input_dim) float32. Returns logits (batch, num_classes) float32."""
    n, in_dim = x.shape
    hid = w_proj.shape[1]
    tot, _, rank = w1_all.shape
    ch = w_c1.shape[1]
    nc = w_c2.shape[1]

    # Streamed activations in bf16 (halves HBM traffic and the x double-buffer);
    # the feature_proj matmul still accumulates in f32 on the MXU.
    x = x.astype(jnp.bfloat16)
    w_proj = w_proj.astype(jnp.bfloat16)

    ROW_Q = 16  # bf16 sublane quantum -> keep row tiles 16-aligned
    tm = min(tile_rows, _round_up(n, ROW_Q))
    # v7x has 2 TensorCores: if the batch would produce a single row tile but is
    # big enough to split, halve the tile so ("parallel",) shards across both.
    if n > ROW_Q and _round_up(n, tm) // tm < 2:
        tm = max(ROW_Q, _round_up(-(-n // 2), ROW_Q))
    n_pad = _round_up(n, tm)
    if n_pad != n:
        x = jnp.pad(x, ((0, n_pad - n), (0, 0)))

    out = pl.pallas_call(
        _deltawonorm_kernel,
        out_shape=jax.ShapeDtypeStruct((n_pad, nc), jnp.float32),
        grid_spec=pltpu.PrefetchScalarGridSpec(
            num_scalar_prefetch=0,
            grid=(n_pad // tm,),
            in_specs=[
                pl.BlockSpec((tm, in_dim), lambda i: (i, 0)),         # x rows (bf16)
                pl.BlockSpec((in_dim, hid), lambda i: (0, 0)),        # W_proj (resident)
                pl.BlockSpec((1, hid), lambda i: (0, 0)),             # b_proj
                pl.BlockSpec((tot, hid, rank), lambda i: (0, 0, 0)),  # delta W1 stack
                pl.BlockSpec((tot, rank, hid), lambda i: (0, 0, 0)),  # delta W2 stack
                pl.BlockSpec((1, hid), lambda i: (0, 0)),             # LN gamma
                pl.BlockSpec((1, hid), lambda i: (0, 0)),             # LN beta
                pl.BlockSpec((hid, ch), lambda i: (0, 0)),            # classifier W1
                pl.BlockSpec((1, ch), lambda i: (0, 0)),              # classifier b1
                pl.BlockSpec((ch, nc), lambda i: (0, 0)),             # classifier W2
                pl.BlockSpec((1, nc), lambda i: (0, 0)),              # classifier b2
            ],
            out_specs=pl.BlockSpec((tm, nc), lambda i: (i, 0)),
        ),
        compiler_params=pltpu.CompilerParams(
            dimension_semantics=("parallel",),   # shard row tiles across v7x's 2 TCs
            vmem_limit_bytes=48 * 1024 * 1024,   # explicit (v5e default 16 MiB) and < v7x 64 MiB
        ),
    )(x, w_proj, b_proj.reshape(1, hid), w1_all, w2_all,
      gamma.reshape(1, hid), beta.reshape(1, hid),
      w_c1, b_c1.reshape(1, ch), w_c2, b_c2.reshape(1, nc))

    return out[:n]


def _reference(x, w_proj, b_proj, w1_all, w2_all, gamma, beta,
               w_c1, b_c1, w_c2, b_c2):
    # Exact (HIGHEST-precision f32) reference of the PyTorch forward.
    dot = functools.partial(jnp.dot, precision=_HIGHEST)
    h = jnp.maximum(dot(x, w_proj) + b_proj, 0.0)
    for s in range(w1_all.shape[0]):
        h = h + dot(_gelu_exact(dot(h, w1_all[s])), w2_all[s])
    mean = jnp.mean(h, axis=-1, keepdims=True)
    var = jnp.mean((h - mean) ** 2, axis=-1, keepdims=True)
    hn = (h - mean) * lax.rsqrt(var + LN_EPS) * gamma + beta
    z1 = jnp.maximum(dot(hn, w_c1) + b_c1, 0.0)
    return dot(z1, w_c2) + b_c2


if __name__ == "__main__":
    key = jax.random.PRNGKey(0)
    ks = jax.random.split(key, 10)

    # Module defaults: input_dim=1280, hidden_dim=256, num_layers=2, steps=2,
    # rank=4, classifier hidden 64, num_classes=2. Small batch for the demo.
    B, IN, HID, NL, ST, R, CH, NC = 16, 1280, 256, 2, 2, 4, 64, 2
    TOT = NL * ST

    x = jax.random.normal(ks[0], (B, IN), dtype=jnp.float32)

    def uniform_init(k, shape, fan_in):
        bound = 1.0 / math.sqrt(fan_in)
        return jax.random.uniform(k, shape, minval=-bound, maxval=bound,
                                  dtype=jnp.float32)

    # Weights stored transposed ((in, out)) so the kernel does x @ W directly
    # (equals nn.Linear(out, in).weight.T). Biases match nn.Linear default init range.
    w_proj = uniform_init(ks[1], (IN, HID), IN)
    b_proj = uniform_init(ks[2], (HID,), IN)
    w1_all = uniform_init(ks[3], (TOT, HID, R), HID)   # Linear(dim->rank), no bias
    w2_all = uniform_init(ks[4], (TOT, R, HID), R)     # Linear(rank->dim), no bias
    gamma = jnp.ones((HID,), dtype=jnp.float32)        # LayerNorm default
    beta = jnp.zeros((HID,), dtype=jnp.float32)
    w_c1 = uniform_init(ks[5], (HID, CH), HID)
    b_c1 = uniform_init(ks[6], (CH,), HID)
    w_c2 = uniform_init(ks[7], (CH, NC), CH)
    b_c2 = uniform_init(ks[8], (NC,), CH)

    out = deltawonorm_forward(x, w_proj, b_proj, w1_all, w2_all, gamma, beta,
                              w_c1, b_c1, w_c2, b_c2)
    out = jax.block_until_ready(out)

    ref = _reference(x, w_proj, b_proj, w1_all, w2_all, gamma, beta,
                     w_c1, b_c1, w_c2, b_c2)
    assert out.shape == (B, NC)
    # Kernel runs single-pass bf16 MXU (DEFAULT precision) + bf16-cast x, so the
    # expected deviation from the exact f32 reference is ~1e-3 on O(0.3) logits;
    # 2e-2 gives a comfortable margin.
    assert jnp.allclose(out, ref, atol=2e-2, rtol=2e-2), "mismatch vs reference"
    print("KERNEL_OK")
</pallas_src>

<mosaic_0001>
module attributes {stable_mosaic.version = 11 : i64} {
  func.func @_deltawonorm_kernel(%arg0: i32, %arg1: memref<16x1280xbf16, #tpu.memory_space<vmem>>, %arg2: memref<1280x256xbf16, #tpu.memory_space<vmem>>, %arg3: memref<1x256xf32, #tpu.memory_space<vmem>>, %arg4: memref<4x256x4xf32, #tpu.memory_space<vmem>>, %arg5: memref<4x4x256xf32, #tpu.memory_space<vmem>>, %arg6: memref<1x256xf32, #tpu.memory_space<vmem>>, %arg7: memref<1x256xf32, #tpu.memory_space<vmem>>, %arg8: memref<256x64xf32, #tpu.memory_space<vmem>>, %arg9: memref<1x64xf32, #tpu.memory_space<vmem>>, %arg10: memref<64x2xf32, #tpu.memory_space<vmem>>, %arg11: memref<1x2xf32, #tpu.memory_space<vmem>>, %arg12: memref<16x2xf32, #tpu.memory_space<vmem>>) attributes {dimension_semantics = [#tpu.dimension_semantics<parallel>], iteration_bounds = array<i64: 1>, scalar_prefetch = 0 : i64, scratch_operands = 0 : i64, tpu.core_type = #tpu.core_type<tc>, window_params = [{transform_indices = @transform_0, window_bounds = array<i64: 16, 1280>}, {pipeline_mode = #tpu.pipeline_mode<synchronous>, transform_indices = @transform_1, window_bounds = array<i64: 1280, 256>}, {pipeline_mode = #tpu.pipeline_mode<synchronous>, transform_indices = @transform_2, window_bounds = array<i64: 1, 256>}, {pipeline_mode = #tpu.pipeline_mode<synchronous>, transform_indices = @transform_3, window_bounds = array<i64: 4, 256, 4>}, {pipeline_mode = #tpu.pipeline_mode<synchronous>, transform_indices = @transform_4, window_bounds = array<i64: 4, 4, 256>}, {pipeline_mode = #tpu.pipeline_mode<synchronous>, transform_indices = @transform_5, window_bounds = array<i64: 1, 256>}, {pipeline_mode = #tpu.pipeline_mode<synchronous>, transform_indices = @transform_6, window_bounds = array<i64: 1, 256>}, {pipeline_mode = #tpu.pipeline_mode<synchronous>, transform_indices = @transform_7, window_bounds = array<i64: 256, 64>}, {pipeline_mode = #tpu.pipeline_mode<synchronous>, transform_indices = @transform_8, window_bounds = array<i64: 1, 64>}, {pipeline_mode = #tpu.pipeline_mode<synchronous>, transform_indices = @transform_9, window_bounds = array<i64: 64, 2>}, {pipeline_mode = #tpu.pipeline_mode<synchronous>, transform_indices = @transform_10, window_bounds = array<i64: 1, 2>}, {transform_indices = @transform_11, window_bounds = array<i64: 16, 2>}]} {
    %c0 = arith.constant 0 : index
    %c0_0 = arith.constant 0 : index
    %0 = vector.load %arg1[%c0, %c0_0] : memref<16x1280xbf16, #tpu.memory_space<vmem>>, vector<16x1280xbf16>
    %c0_1 = arith.constant 0 : index
    %c0_2 = arith.constant 0 : index
    %1 = vector.load %arg2[%c0_1, %c0_2] : memref<1280x256xbf16, #tpu.memory_space<vmem>>, vector<1280x256xbf16>
    %cst = arith.constant dense<0.000000e+00> : vector<16x256xf32>
    %2 = tpu.matmul %0, %1, %cst {dimension_numbers = #tpu.dot_dimension_numbers<[1], [0], [0], [1], [0, 0, 1, 1], [], []>} : vector<16x1280xbf16>, vector<1280x256xbf16>, vector<16x256xf32> -> vector<16x256xf32>
    %c0_3 = arith.constant 0 : index
    %c0_4 = arith.constant 0 : index
    %3 = vector.load %arg3[%c0_3, %c0_4] : memref<1x256xf32, #tpu.memory_space<vmem>>, vector<1x256xf32>
    %4 = vector.broadcast %3 : vector<1x256xf32> to vector<16x256xf32>
    %5 = arith.addf %2, %4 : vector<16x256xf32>
    %cst_5 = arith.constant 0.000000e+00 : f32
    %6 = vector.broadcast %cst_5 : f32 to vector<16x256xf32>
    %7 = arith.maximumf %5, %6 : vector<16x256xf32>
    %c0_6 = arith.constant 0 : index
    %c0_7 = arith.constant 0 : index
    %c0_8 = arith.constant 0 : index
    %8 = vector.load %arg4[%c0_6, %c0_7, %c0_8] : memref<4x256x4xf32, #tpu.memory_space<vmem>>, vector<1x256x4xf32>
    %9 = vector.shape_cast %8 : vector<1x256x4xf32> to vector<256x4xf32>
    %cst_9 = arith.constant dense<0.000000e+00> : vector<16x4xf32>
    %10 = tpu.matmul %7, %9, %cst_9 {dimension_numbers = #tpu.dot_dimension_numbers<[1], [0], [0], [1], [0, 0, 1, 1], [], []>} : vector<16x256xf32>, vector<256x4xf32>, vector<16x4xf32> -> vector<16x4xf32>
    %cst_10 = arith.constant 5.000000e-01 : f32
    %11 = vector.broadcast %cst_10 : f32 to vector<16x4xf32>
    %12 = arith.mulf %11, %10 : vector<16x4xf32>
    %cst_11 = arith.constant 1.41421354 : f32
    %13 = vector.broadcast %cst_11 : f32 to vector<16x4xf32>
    %14 = arith.divf %10, %13 : vector<16x4xf32>
    %15 = math.erf %14 : vector<16x4xf32>
    %cst_12 = arith.constant 1.000000e+00 : f32
    %16 = vector.broadcast %cst_12 : f32 to vector<16x4xf32>
    %17 = arith.addf %16, %15 : vector<16x4xf32>
    %18 = arith.mulf %12, %17 : vector<16x4xf32>
    %c0_13 = arith.constant 0 : index
    %c0_14 = arith.constant 0 : index
    %c0_15 = arith.constant 0 : index
    %19 = vector.load %arg5[%c0_13, %c0_14, %c0_15] : memref<4x4x256xf32, #tpu.memory_space<vmem>>, vector<1x4x256xf32>
    %20 = vector.shape_cast %19 : vector<1x4x256xf32> to vector<4x256xf32>
    %21 = vector.extract_strided_slice %18 {offsets = [0, 0], sizes = [16, 1], strides = [1, 1]} : vector<16x4xf32> to vector<16x1xf32>
    %22 = vector.extract_strided_slice %20 {offsets = [0, 0], sizes = [1, 256], strides = [1, 1]} : vector<4x256xf32> to vector<1x256xf32>
    %23 = vector.broadcast %21 : vector<16x1xf32> to vector<16x256xf32>
    %24 = vector.broadcast %22 : vector<1x256xf32> to vector<16x256xf32>
    %25 = arith.mulf %23, %24 : vector<16x256xf32>
    %26 = arith.addf %7, %25 : vector<16x256xf32>
    %27 = vector.extract_strided_slice %18 {offsets = [0, 1], sizes = [16, 1], strides = [1, 1]} : vector<16x4xf32> to vector<16x1xf32>
    %28 = vector.extract_strided_slice %20 {offsets = [1, 0], sizes = [1, 256], strides = [1, 1]} : vector<4x256xf32> to vector<1x256xf32>
    %29 = vector.broadcast %27 : vector<16x1xf32> to vector<16x256xf32>
    %30 = vector.broadcast %28 : vector<1x256xf32> to vector<16x256xf32>
    %31 = arith.mulf %29, %30 : vector<16x256xf32>
    %32 = arith.addf %26, %31 : vector<16x256xf32>
    %33 = vector.extract_strided_slice %18 {offsets = [0, 2], sizes = [16, 1], strides = [1, 1]} : vector<16x4xf32> to vector<16x1xf32>
    %34 = vector.extract_strided_slice %20 {offsets = [2, 0], sizes = [1, 256], strides = [1, 1]} : vector<4x256xf32> to vector<1x256xf32>
    %35 = vector.broadcast %33 : vector<16x1xf32> to vector<16x256xf32>
    %36 = vector.broadcast %34 : vector<1x256xf32> to vector<16x256xf32>
    %37 = arith.mulf %35, %36 : vector<16x256xf32>
    %38 = arith.addf %32, %37 : vector<16x256xf32>
    %39 = vector.extract_strided_slice %18 {offsets = [0, 3], sizes = [16, 1], strides = [1, 1]} : vector<16x4xf32> to vector<16x1xf32>
    %40 = vector.extract_strided_slice %20 {offsets = [3, 0], sizes = [1, 256], strides = [1, 1]} : vector<4x256xf32> to vector<1x256xf32>
    %41 = vector.broadcast %39 : vector<16x1xf32> to vector<16x256xf32>
    %42 = vector.broadcast %40 : vector<1x256xf32> to vector<16x256xf32>
    %43 = arith.mulf %41, %42 : vector<16x256xf32>
    %44 = arith.addf %38, %43 : vector<16x256xf32>
    %c1 = arith.constant 1 : index
    %c0_16 = arith.constant 0 : index
    %c0_17 = arith.constant 0 : index
    %45 = vector.load %arg4[%c1, %c0_16, %c0_17] : memref<4x256x4xf32, #tpu.memory_space<vmem>>, vector<1x256x4xf32>
    %46 = vector.shape_cast %45 : vector<1x256x4xf32> to vector<256x4xf32>
    %cst_18 = arith.constant dense<0.000000e+00> : vector<16x4xf32>
    %47 = tpu.matmul %44, %46, %cst_18 {dimension_numbers = #tpu.dot_dimension_numbers<[1], [0], [0], [1], [0, 0, 1, 1], [], []>} : vector<16x256xf32>, vector<256x4xf32>, vector<16x4xf32> -> vector<16x4xf32>
    %cst_19 = arith.constant 5.000000e-01 : f32
    %48 = vector.broadcast %cst_19 : f32 to vector<16x4xf32>
    %49 = arith.mulf %48, %47 : vector<16x4xf32>
    %cst_20 = arith.constant 1.41421354 : f32
    %50 = vector.broadcast %cst_20 : f32 to vector<16x4xf32>
    %51 = arith.divf %47, %50 : vector<16x4xf32>
    %52 = math.erf %51 : vector<16x4xf32>
    %cst_21 = arith.constant 1.000000e+00 : f32
    %53 = vector.broadcast %cst_21 : f32 to vector<16x4xf32>
    %54 = arith.addf %53, %52 : vector<16x4xf32>
    %55 = arith.mulf %49, %54 : vector<16x4xf32>
    %c1_22 = arith.constant 1 : index
    %c0_23 = arith.constant 0 : index
    %c0_24 = arith.constant 0 : index
    %56 = vector.load %arg5[%c1_22, %c0_23, %c0_24] : memref<4x4x256xf32, #tpu.memory_space<vmem>>, vector<1x4x256xf32>
    %57 = vector.shape_cast %56 : vector<1x4x256xf32> to vector<4x256xf32>
    %58 = vector.extract_strided_slice %55 {offsets = [0, 0], sizes = [16, 1], strides = [1, 1]} : vector<16x4xf32> to vector<16x1xf32>
    %59 = vector.extract_strided_slice %57 {offsets = [0, 0], sizes = [1, 256], strides = [1, 1]} : vector<4x256xf32> to vector<1x256xf32>
    %60 = vector.broadcast %58 : vector<16x1xf32> to vector<16x256xf32>
    %61 = vector.broadcast %59 : vector<1x256xf32> to vector<16x256xf32>
    %62 = arith.mulf %60, %61 : vector<16x256xf32>
    %63 = arith.addf %44, %62 : vector<16x256xf32>
    %64 = vector.extract_strided_slice %55 {offsets = [0, 1], sizes = [16, 1], strides = [1, 1]} : vector<16x4xf32> to vector<16x1xf32>
    %65 = vector.extract_strided_slice %57 {offsets = [1, 0], sizes = [1, 256], strides = [1, 1]} : vector<4x256xf32> to vector<1x256xf32>
    %66 = vector.broadcast %64 : vector<16x1xf32> to vector<16x256xf32>
    %67 = vector.broadcast %65 : vector<1x256xf32> to vector<16x256xf32>
    %68 = arith.mulf %66, %67 : vector<16x256xf32>
    %69 = arith.addf %63, %68 : vector<16x256xf32>
    %70 = vector.extract_strided_slice %55 {offsets = [0, 2], sizes = [16, 1], strides = [1, 1]} : vector<16x4xf32> to vector<16x1xf32>
    %71 = vector.extract_strided_slice %57 {offsets = [2, 0], sizes = [1, 256], strides = [1, 1]} : vector<4x256xf32> to vector<1x256xf32>
    %72 = vector.broadcast %70 : vector<16x1xf32> to vector<16x256xf32>
    %73 = vector.broadcast %71 : vector<1x256xf32> to vector<16x256xf32>
    %74 = arith.mulf %72, %73 : vector<16x256xf32>
    %75 = arith.addf %69, %74 : vector<16x256xf32>
    %76 = vector.extract_strided_slice %55 {offsets = [0, 3], sizes = [16, 1], strides = [1, 1]} : vector<16x4xf32> to vector<16x1xf32>
    %77 = vector.extract_strided_slice %57 {offsets = [3, 0], sizes = [1, 256], strides = [1, 1]} : vector<4x256xf32> to vector<1x256xf32>
    %78 = vector.broadcast %76 : vector<16x1xf32> to vector<16x256xf32>
    %79 = vector.broadcast %77 : vector<1x256xf32> to vector<16x256xf32>
    %80 = arith.mulf %78, %79 : vector<16x256xf32>
    %81 = arith.addf %75, %80 : vector<16x256xf32>
    %c2 = arith.constant 2 : index
    %c0_25 = arith.constant 0 : index
    %c0_26 = arith.constant 0 : index
    %82 = vector.load %arg4[%c2, %c0_25, %c0_26] : memref<4x256x4xf32, #tpu.memory_space<vmem>>, vector<1x256x4xf32>
    %83 = vector.shape_cast %82 : vector<1x256x4xf32> to vector<256x4xf32>
    %cst_27 = arith.constant dense<0.000000e+00> : vector<16x4xf32>
    %84 = tpu.matmul %81, %83, %cst_27 {dimension_numbers = #tpu.dot_dimension_numbers<[1], [0], [0], [1], [0, 0, 1, 1], [], []>} : vector<16x256xf32>, vector<256x4xf32>, vector<16x4xf32> -> vector<16x4xf32>
    %cst_28 = arith.constant 5.000000e-01 : f32
    %85 = vector.broadcast %cst_28 : f32 to vector<16x4xf32>
    %86 = arith.mulf %85, %84 : vector<16x4xf32>
    %cst_29 = arith.constant 1.41421354 : f32
    %87 = vector.broadcast %cst_29 : f32 to vector<16x4xf32>
    %88 = arith.divf %84, %87 : vector<16x4xf32>
    %89 = math.erf %88 : vector<16x4xf32>
    %cst_30 = arith.constant 1.000000e+00 : f32
    %90 = vector.broadcast %cst_30 : f32 to vector<16x4xf32>
    %91 = arith.addf %90, %89 : vector<16x4xf32>
    %92 = arith.mulf %86, %91 : vector<16x4xf32>
    %c2_31 = arith.constant 2 : index
    %c0_32 = arith.constant 0 : index
    %c0_33 = arith.constant 0 : index
    %93 = vector.load %arg5[%c2_31, %c0_32, %c0_33] : memref<4x4x256xf32, #tpu.memory_space<vmem>>, vector<1x4x256xf32>
    %94 = vector.shape_cast %93 : vector<1x4x256xf32> to vector<4x256xf32>
    %95 = vector.extract_strided_slice %92 {offsets = [0, 0], sizes = [16, 1], strides = [1, 1]} : vector<16x4xf32> to vector<16x1xf32>
    %96 = vector.extract_strided_slice %94 {offsets = [0, 0], sizes = [1, 256], strides = [1, 1]} : vector<4x256xf32> to vector<1x256xf32>
    %97 = vector.broadcast %95 : vector<16x1xf32> to vector<16x256xf32>
    %98 = vector.broadcast %96 : vector<1x256xf32> to vector<16x256xf32>
    %99 = arith.mulf %97, %98 : vector<16x256xf32>
    %100 = arith.addf %81, %99 : vector<16x256xf32>
    %101 = vector.extract_strided_slice %92 {offsets = [0, 1], sizes = [16, 1], strides = [1, 1]} : vector<16x4xf32> to vector<16x1xf32>
    %102 = vector.extract_strided_slice %94 {offsets = [1, 0], sizes = [1, 256], strides = [1, 1]} : vector<4x256xf32> to vector<1x256xf32>
    %103 = vector.broadcast %101 : vector<16x1xf32> to vector<16x256xf32>
    %104 = vector.broadcast %102 : vector<1x256xf32> to vector<16x256xf32>
    %105 = arith.mulf %103, %104 : vector<16x256xf32>
    %106 = arith.addf %100, %105 : vector<16x256xf32>
    %107 = vector.extract_strided_slice %92 {offsets = [0, 2], sizes = [16, 1], strides = [1, 1]} : vector<16x4xf32> to vector<16x1xf32>
    %108 = vector.extract_strided_slice %94 {offsets = [2, 0], sizes = [1, 256], strides = [1, 1]} : vector<4x256xf32> to vector<1x256xf32>
    %109 = vector.broadcast %107 : vector<16x1xf32> to vector<16x256xf32>
    %110 = vector.broadcast %108 : vector<1x256xf32> to vector<16x256xf32>
    %111 = arith.mulf %109, %110 : vector<16x256xf32>
    %112 = arith.addf %106, %111 : vector<16x256xf32>
    %113 = vector.extract_strided_slice %92 {offsets = [0, 3], sizes = [16, 1], strides = [1, 1]} : vector<16x4xf32> to vector<16x1xf32>
    %114 = vector.extract_strided_slice %94 {offsets = [3, 0], sizes = [1, 256], strides = [1, 1]} : vector<4x256xf32> to vector<1x256xf32>
    %115 = vector.broadcast %113 : vector<16x1xf32> to vector<16x256xf32>
    %116 = vector.broadcast %114 : vector<1x256xf32> to vector<16x256xf32>
    %117 = arith.mulf %115, %116 : vector<16x256xf32>
    %118 = arith.addf %112, %117 : vector<16x256xf32>
    %c3 = arith.constant 3 : index
    %c0_34 = arith.constant 0 : index
    %c0_35 = arith.constant 0 : index
    %119 = vector.load %arg4[%c3, %c0_34, %c0_35] : memref<4x256x4xf32, #tpu.memory_space<vmem>>, vector<1x256x4xf32>
    %120 = vector.shape_cast %119 : vector<1x256x4xf32> to vector<256x4xf32>
    %cst_36 = arith.constant dense<0.000000e+00> : vector<16x4xf32>
    %121 = tpu.matmul %118, %120, %cst_36 {dimension_numbers = #tpu.dot_dimension_numbers<[1], [0], [0], [1], [0, 0, 1, 1], [], []>} : vector<16x256xf32>, vector<256x4xf32>, vector<16x4xf32> -> vector<16x4xf32>
    %cst_37 = arith.constant 5.000000e-01 : f32
    %122 = vector.broadcast %cst_37 : f32 to vector<16x4xf32>
    %123 = arith.mulf %122, %121 : vector<16x4xf32>
    %cst_38 = arith.constant 1.41421354 : f32
    %124 = vector.broadcast %cst_38 : f32 to vector<16x4xf32>
    %125 = arith.divf %121, %124 : vector<16x4xf32>
    %126 = math.erf %125 : vector<16x4xf32>
    %cst_39 = arith.constant 1.000000e+00 : f32
    %127 = vector.broadcast %cst_39 : f32 to vector<16x4xf32>
    %128 = arith.addf %127, %126 : vector<16x4xf32>
    %129 = arith.mulf %123, %128 : vector<16x4xf32>
    %c3_40 = arith.constant 3 : index
    %c0_41 = arith.constant 0 : index
    %c0_42 = arith.constant 0 : index
    %130 = vector.load %arg5[%c3_40, %c0_41, %c0_42] : memref<4x4x256xf32, #tpu.memory_space<vmem>>, vector<1x4x256xf32>
    %131 = vector.shape_cast %130 : vector<1x4x256xf32> to vector<4x256xf32>
    %132 = vector.extract_strided_slice %129 {offsets = [0, 0], sizes = [16, 1], strides = [1, 1]} : vector<16x4xf32> to vector<16x1xf32>
    %133 = vector.extract_strided_slice %131 {offsets = [0, 0], sizes = [1, 256], strides = [1, 1]} : vector<4x256xf32> to vector<1x256xf32>
    %134 = vector.broadcast %132 : vector<16x1xf32> to vector<16x256xf32>
    %135 = vector.broadcast %133 : vector<1x256xf32> to vector<16x256xf32>
    %136 = arith.mulf %134, %135 : vector<16x256xf32>
    %137 = arith.addf %118, %136 : vector<16x256xf32>
    %138 = vector.extract_strided_slice %129 {offsets = [0, 1], sizes = [16, 1], strides = [1, 1]} : vector<16x4xf32> to vector<16x1xf32>
    %139 = vector.extract_strided_slice %131 {offsets = [1, 0], sizes = [1, 256], strides = [1, 1]} : vector<4x256xf32> to vector<1x256xf32>
    %140 = vector.broadcast %138 : vector<16x1xf32> to vector<16x256xf32>
    %141 = vector.broadcast %139 : vector<1x256xf32> to vector<16x256xf32>
    %142 = arith.mulf %140, %141 : vector<16x256xf32>
    %143 = arith.addf %137, %142 : vector<16x256xf32>
    %144 = vector.extract_strided_slice %129 {offsets = [0, 2], sizes = [16, 1], strides = [1, 1]} : vector<16x4xf32> to vector<16x1xf32>
    %145 = vector.extract_strided_slice %131 {offsets = [2, 0], sizes = [1, 256], strides = [1, 1]} : vector<4x256xf32> to vector<1x256xf32>
    %146 = vector.broadcast %144 : vector<16x1xf32> to vector<16x256xf32>
    %147 = vector.broadcast %145 : vector<1x256xf32> to vector<16x256xf32>
    %148 = arith.mulf %146, %147 : vector<16x256xf32>
    %149 = arith.addf %143, %148 : vector<16x256xf32>
    %150 = vector.extract_strided_slice %129 {offsets = [0, 3], sizes = [16, 1], strides = [1, 1]} : vector<16x4xf32> to vector<16x1xf32>
    %151 = vector.extract_strided_slice %131 {offsets = [3, 0], sizes = [1, 256], strides = [1, 1]} : vector<4x256xf32> to vector<1x256xf32>
    %152 = vector.broadcast %150 : vector<16x1xf32> to vector<16x256xf32>
    %153 = vector.broadcast %151 : vector<1x256xf32> to vector<16x256xf32>
    %154 = arith.mulf %152, %153 : vector<16x256xf32>
    %155 = arith.addf %149, %154 : vector<16x256xf32>
    %cst_43 = arith.constant dense<0.000000e+00> : vector<16xf32>
    %156 = vector.multi_reduction <add>, %155, %cst_43 [1] : vector<16x256xf32> to vector<16xf32>
    %157 = vector.shape_cast %156 : vector<16xf32> to vector<16x1xf32>
    %cst_44 = arith.constant 2.560000e+02 : f32
    %158 = vector.broadcast %cst_44 : f32 to vector<16x1xf32>
    %159 = arith.divf %157, %158 : vector<16x1xf32>
    %160 = vector.broadcast %159 : vector<16x1xf32> to vector<16x256xf32>
    %161 = arith.subf %155, %160 : vector<16x256xf32>
    %162 = arith.mulf %161, %161 : vector<16x256xf32>
    %cst_45 = arith.constant dense<0.000000e+00> : vector<16xf32>
    %163 = vector.multi_reduction <add>, %162, %cst_45 [1] : vector<16x256xf32> to vector<16xf32>
    %164 = vector.shape_cast %163 : vector<16xf32> to vector<16x1xf32>
    %cst_46 = arith.constant 2.560000e+02 : f32
    %165 = vector.broadcast %cst_46 : f32 to vector<16x1xf32>
    %166 = arith.divf %164, %165 : vector<16x1xf32>
    %cst_47 = arith.constant 9.99999974E-6 : f32
    %167 = vector.broadcast %cst_47 : f32 to vector<16x1xf32>
    %168 = arith.addf %166, %167 : vector<16x1xf32>
    %169 = math.rsqrt %168 : vector<16x1xf32>
    %170 = vector.broadcast %169 : vector<16x1xf32> to vector<16x256xf32>
    %171 = arith.mulf %161, %170 : vector<16x256xf32>
    %c0_48 = arith.constant 0 : index
    %c0_49 = arith.constant 0 : index
    %172 = vector.load %arg6[%c0_48, %c0_49] : memref<1x256xf32, #tpu.memory_space<vmem>>, vector<1x256xf32>
    %173 = vector.broadcast %172 : vector<1x256xf32> to vector<16x256xf32>
    %174 = arith.mulf %171, %173 : vector<16x256xf32>
    %c0_50 = arith.constant 0 : index
    %c0_51 = arith.constant 0 : index
    %175 = vector.load %arg7[%c0_50, %c0_51] : memref<1x256xf32, #tpu.memory_space<vmem>>, vector<1x256xf32>
    %176 = vector.broadcast %175 : vector<1x256xf32> to vector<16x256xf32>
    %177 = arith.addf %174, %176 : vector<16x256xf32>
    %c0_52 = arith.constant 0 : index
    %c0_53 = arith.constant 0 : index
    %178 = vector.load %arg8[%c0_52, %c0_53] : memref<256x64xf32, #tpu.memory_space<vmem>>, vector<256x64xf32>
    %cst_54 = arith.constant dense<0.000000e+00> : vector<16x64xf32>
    %179 = tpu.matmul %177, %178, %cst_54 {dimension_numbers = #tpu.dot_dimension_numbers<[1], [0], [0], [1], [0, 0, 1, 1], [], []>} : vector<16x256xf32>, vector<256x64xf32>, vector<16x64xf32> -> vector<16x64xf32>
    %c0_55 = arith.constant 0 : index
    %c0_56 = arith.constant 0 : index
    %180 = vector.load %arg9[%c0_55, %c0_56] : memref<1x64xf32, #tpu.memory_space<vmem>>, vector<1x64xf32>
    %181 = vector.broadcast %180 : vector<1x64xf32> to vector<16x64xf32>
    %182 = arith.addf %179, %181 : vector<16x64xf32>
    %cst_57 = arith.constant 0.000000e+00 : f32
    %183 = vector.broadcast %cst_57 : f32 to vector<16x64xf32>
    %184 = arith.maximumf %182, %183 : vector<16x64xf32>
    %c0_58 = arith.constant 0 : index
    %c0_59 = arith.constant 0 : index
    %185 = vector.load %arg10[%c0_58, %c0_59] : memref<64x2xf32, #tpu.memory_space<vmem>>, vector<64x2xf32>
    %cst_60 = arith.constant dense<0.000000e+00> : vector<16x2xf32>
    %186 = tpu.matmul %184, %185, %cst_60 {dimension_numbers = #tpu.dot_dimension_numbers<[1], [0], [0], [1], [0, 0, 1, 1], [], []>} : vector<16x64xf32>, vector<64x2xf32>, vector<16x2xf32> -> vector<16x2xf32>
    %c0_61 = arith.constant 0 : index
    %c0_62 = arith.constant 0 : index
    %187 = vector.load %arg11[%c0_61, %c0_62] : memref<1x2xf32, #tpu.memory_space<vmem>>, vector<1x2xf32>
    %188 = vector.broadcast %187 : vector<1x2xf32> to vector<16x2xf32>
    %189 = arith.addf %186, %188 : vector<16x2xf32>
    %c0_63 = arith.constant 0 : index
    %c0_64 = arith.constant 0 : index
    %190 = vector.load %arg12[%c0_63, %c0_64] : memref<16x2xf32, #tpu.memory_space<vmem>>, vector<16x2xf32>
    tpu.vector_store %arg12[%c0_63, %c0_64], %189 {strides = array<i32>} : memref<16x2xf32, #tpu.memory_space<vmem>>, vector<16x2xf32>,
    return
  }
  func.func @transform_0(%arg0: i32) -> (i32, i32) {
    %c0_i32 = arith.constant 0 : i32
    %c0_i32_0 = arith.constant 0 : i32
    return %arg0, %c0_i32 : i32, i32
  }
  func.func @transform_1(%arg0: i32) -> (i32, i32) {
    %c0_i32 = arith.constant 0 : i32
    %c0_i32_0 = arith.constant 0 : i32
    %c0_i32_1 = arith.constant 0 : i32
    return %c0_i32, %c0_i32_0 : i32, i32
  }
  func.func @transform_2(%arg0: i32) -> (i32, i32) {
    %c0_i32 = arith.constant 0 : i32
    %c0_i32_0 = arith.constant 0 : i32
    %c0_i32_1 = arith.constant 0 : i32
    return %c0_i32, %c0_i32_0 : i32, i32
  }
  func.func @transform_3(%arg0: i32) -> (i32, i32, i32) {
    %c0_i32 = arith.constant 0 : i32
    %c0_i32_0 = arith.constant 0 : i32
    %c0_i32_1 = arith.constant 0 : i32
    %c0_i32_2 = arith.constant 0 : i32
    return %c0_i32, %c0_i32_0, %c0_i32_1 : i32, i32, i32
  }
  func.func @transform_4(%arg0: i32) -> (i32, i32, i32) {
    %c0_i32 = arith.constant 0 : i32
    %c0_i32_0 = arith.constant 0 : i32
    %c0_i32_1 = arith.constant 0 : i32
    %c0_i32_2 = arith.constant 0 : i32
    return %c0_i32, %c0_i32_0, %c0_i32_1 : i32, i32, i32
  }
  func.func @transform_5(%arg0: i32) -> (i32, i32) {
    %c0_i32 = arith.constant 0 : i32
    %c0_i32_0 = arith.constant 0 : i32
    %c0_i32_1 = arith.constant 0 : i32
    return %c0_i32, %c0_i32_0 : i32, i32
  }
  func.func @transform_6(%arg0: i32) -> (i32, i32) {
    %c0_i32 = arith.constant 0 : i32
    %c0_i32_0 = arith.constant 0 : i32
    %c0_i32_1 = arith.constant 0 : i32
    return %c0_i32, %c0_i32_0 : i32, i32
  }
  func.func @transform_7(%arg0: i32) -> (i32, i32) {
    %c0_i32 = arith.constant 0 : i32
    %c0_i32_0 = arith.constant 0 : i32
    %c0_i32_1 = arith.constant 0 : i32
    return %c0_i32, %c0_i32_0 : i32, i32
  }
  func.func @transform_8(%arg0: i32) -> (i32, i32) {
    %c0_i32 = arith.constant 0 : i32
    %c0_i32_0 = arith.constant 0 : i32
    %c0_i32_1 = arith.constant 0 : i32
    return %c0_i32, %c0_i32_0 : i32, i32
  }
  func.func @transform_9(%arg0: i32) -> (i32, i32) {
    %c0_i32 = arith.constant 0 : i32
    %c0_i32_0 = arith.constant 0 : i32
    %c0_i32_1 = arith.constant 0 : i32
    return %c0_i32, %c0_i32_0 : i32, i32
  }
  func.func @transform_10(%arg0: i32) -> (i32, i32) {
    %c0_i32 = arith.constant 0 : i32
    %c0_i32_0 = arith.constant 0 : i32
    %c0_i32_1 = arith.constant 0 : i32
    return %c0_i32, %c0_i32_0 : i32, i32
  }
  func.func @transform_11(%arg0: i32) -> (i32, i32) {
    %c0_i32 = arith.constant 0 : i32
    %c0_i32_0 = arith.constant 0 : i32
    return %arg0, %c0_i32 : i32, i32
  }
}

</mosaic_0001>

<bundles_post_ra>
// kernel: tpu_custom_call.1
= control target key start
LH: loop header
LB: loop body
LE: loop exit
PB: predicated region body
PF: predicated region fallthrough
CT: control target
= control target key end

     0   :  { %vm2520_vm0 = vcmask 523264   ;;  %vm2602_vm1 = vcmask 15360   ;;  %s4939_s1 = inlined_call_operand.vmem [shape: bf16[1280,256], index: 1, kind: input, shape index: {}]   ;;  %s4940_s0 = inlined_call_operand.vmem [shape: bf16[16,1280], index: 0, kind: input, shape index: {}]   ;;  %s4941_s3 = inlined_call_operand.vmem [shape: f32[4,256,4], index: 3, kind: input, shape index: {}]   ;;  %s4942_s2 = inlined_call_operand.vmem [shape: f32[1,256], index: 2, kind: input, shape index: {}]   ;;  %s4943_s4 = inlined_call_operand.vmem [shape: f32[4,4,256], index: 4, kind: input, shape index: {}]   ;;  %s4944_s7 = inlined_call_operand.vmem [shape: f32[256,64], index: 7, kind: input, shape index: {}]   ;;  %s4945_s5 = inlined_call_operand.vmem [shape: f32[1,256], index: 5, kind: input, shape index: {}]   ;;  %s4946_s6 = inlined_call_operand.vmem [shape: f32[1,256], index: 6, kind: input, shape index: {}]   ;;  %s4947_s9 = inlined_call_operand.vmem [shape: f32[64,2], index: 9, kind: input, shape index: {}]   ;;  %s4948_s8 = inlined_call_operand.vmem [shape: f32[1,64], index: 8, kind: input, shape index: {}]   ;;  %s4949_s10 = inlined_call_operand.vmem [shape: f32[1,2], index: 10, kind: input, shape index: {}]   ;;  %s4950_s11 = inlined_call_operand.vmem [shape: f32[16,2], index: 11, kind: output, shape index: {}]  }
   0x1   :  { %v3331_v0 = vld [vmem:[%s4939_s1 + $0x104] ss:$8 sps:$4 sm:$0xff]   ;;  %v3333_v1 = vld [vmem:[%s4939_s1 + $0x100] ss:$8 sps:$4 sm:$0xff]   ;;  %v3334_v2 = vld [vmem:[%s4939_s1 + $0x114] ss:$8 sps:$4 sm:$0xff]  }
   0x2   :  { %1113 = vmatprep.subr.bf16.mxu0 %v3331_v0  ;;  %v3336_v3 = vld [vmem:[%s4939_s1 + $0x110] ss:$8 sps:$4 sm:$0xff]   ;;  %v3337_v4 = vld [vmem:[%s4939_s1 + $0x124] ss:$8 sps:$4 sm:$0xff]   ;;  %v3339_v5 = vld [vmem:[%s4939_s1 + $0x120] ss:$8 sps:$4 sm:$0xff]  }
   0x3   :  { %1114 = vmatpush1.bf16.msra.mxu0 %v3333_v1  ;;  %v3340_v6 = vld [vmem:[%s4939_s1 + $0x134] ss:$8 sps:$4 sm:$0xff]   ;;  %v3342_v7 = vld [vmem:[%s4939_s1 + $0x130] ss:$8 sps:$4 sm:$0xff]   ;;  %v3343_v8 = vld [vmem:[%s4939_s1 + $0x144] ss:$8 sps:$4 sm:$0xff]  }
   0x4   :  { %1115 = vmatprep.subr.bf16.mxu0 %v3334_v2  ;;  %v3345_v9 = vld [vmem:[%s4939_s1 + $0x140] ss:$8 sps:$4 sm:$0xff]   ;;  %v3346_v10 = vld [vmem:[%s4939_s1 + $0x154] ss:$8 sps:$4 sm:$0xff]   ;;  %v3348_v11 = vld [vmem:[%s4939_s1 + $0x150] ss:$8 sps:$4 sm:$0xff]  }
   0x5   :  { %v3349_v12 = vld [vmem:[%s4939_s1 + $0x164] ss:$8 sps:$4 sm:$0xff]   ;;  %v3351_v14 = vld [vmem:[%s4939_s1 + $0x160] ss:$8 sps:$4 sm:$0xff]   ;;  %v3352_v15 = vld [vmem:[%s4939_s1 + $0x174] ss:$8 sps:$4 sm:$0xff]  }
   0x6   :  { %v3381_v13 = vld [vmem:[%s4940_s0 + $0xc] ss:$40 sps:$4 sm:$0xff]   ;;  %v3354_v16 = vld [vmem:[%s4939_s1 + $0x170] ss:$8 sps:$4 sm:$0xff]   ;;  %v3357_v18 = vld [vmem:[%s4939_s1 + $0x180] ss:$8 sps:$4 sm:$0xff]  }
   0x7   :  { %1116 = vmatpush1.bf16.msra.mxu0 %v3336_v3  ;;  %1145 = vmatprep.mubr.bf16.mxu0 %v3381_v13  ;;  %v3355_v17 = vld [vmem:[%s4939_s1 + $0x184] ss:$8 sps:$4 sm:$0xff]   ;;  %v3358_v19 = vld [vmem:[%s4939_s1 + $0x194] ss:$8 sps:$4 sm:$0xff]   ;;  %v3360_v20 = vld [vmem:[%s4939_s1 + $0x190] ss:$8 sps:$4 sm:$0xff]  }
   0x8   :  { %1117 = vmatprep.subr.bf16.mxu0 %v3337_v4  ;;  %v3361_v21 = vld [vmem:[%s4939_s1 + $0x1a4] ss:$8 sps:$4 sm:$0xff]   ;;  %v3363_v22 = vld [vmem:[%s4939_s1 + $0x1a0] ss:$8 sps:$4 sm:$0xff]   ;;  %v3364_v23 = vld [vmem:[%s4939_s1 + $0x1b4] ss:$8 sps:$4 sm:$0xff]  }
   0x9   :  { %v3366_v24 = vld [vmem:[%s4939_s1 + $0x1b0] ss:$8 sps:$4 sm:$0xff]   ;;  %v3367_v25 = vld [vmem:[%s4939_s1 + $0x1c4] ss:$8 sps:$4 sm:$0xff]   ;;  %v3369_v26 = vld [vmem:[%s4939_s1 + $0x1c0] ss:$8 sps:$4 sm:$0xff]  }
   0xa   :  { %v3370_v27 = vld [vmem:[%s4939_s1 + $0x1d4] ss:$8 sps:$4 sm:$0xff]   ;;  %v3372_v28 = vld [vmem:[%s4939_s1 + $0x1d0] ss:$8 sps:$4 sm:$0xff]   ;;  %v3373_v29 = vld [vmem:[%s4939_s1 + $0x1e4] ss:$8 sps:$4 sm:$0xff]  }
   0xb   :  { %1118 = vmatpush1.bf16.msra.mxu0 %v3339_v5  ;;  %v3375_v30 = vld [vmem:[%s4939_s1 + $0x1e0] ss:$8 sps:$4 sm:$0xff]   ;;  %v3376_v31 = vld [vmem:[%s4939_s1 + $0x1f4] ss:$8 sps:$4 sm:$0xff]   ;;  %v3378_v32 = vld [vmem:[%s4939_s1 + $0x1f0] ss:$8 sps:$4 sm:$0xff]  }
   0xc   :  { %1119 = vmatprep.subr.bf16.mxu0 %v3340_v6  ;;  %v3384_v33 = vld [vmem:[%s4939_s1 + $0x204] ss:$8 sps:$4 sm:$0xff]   ;;  %v3379_v34 = vld [vmem:[%s4940_s0 + $0x8] ss:$40 sps:$4 sm:$0xff]   ;;  %v3432_v36 = vld [vmem:[%s4940_s0 + $0x14] ss:$40 sps:$4 sm:$0xff]  }
   0xd   :  { %v3382_v35 = vld [vmem:[%s4939_s1 + $0x200] ss:$8 sps:$4 sm:$0xff]   ;;  %v3387_v37 = vld [vmem:[%s4939_s1 + $0x214] ss:$8 sps:$4 sm:$0xff]   ;;  %v3478_v38 = vld [vmem:[%s4939_s1 + $0x4] ss:$8 sps:$4 sm:$0xff]  }
   0xe   :  { %v3480_v39 = vld [vmem:[%s4939_s1] ss:$8 sps:$4 sm:$0xff]   ;;  %v3385_v40 = vld [vmem:[%s4939_s1 + $0x210] ss:$8 sps:$4 sm:$0xff]   ;;  %v3390_v41 = vld [vmem:[%s4939_s1 + $0x224] ss:$8 sps:$4 sm:$0xff]   ;;  %1070 = vmatprep.subr.bf16.mxu1 %v3478_v38 }
   0xf   :  { %1120 = vmatpush1.bf16.msra.mxu0 %v3342_v7  ;;  %v3484_v42 = vld [vmem:[%s4939_s1 + $0x14] ss:$8 sps:$4 sm:$0xff]   ;;  %1071 = vmatpush1.bf16.msra.mxu1 %v3480_v39  ;;  %v3486_v43 = vld [vmem:[%s4939_s1 + $0x10] ss:$8 sps:$4 sm:$0xff]   ;;  %v3388_v44 = vld [vmem:[%s4939_s1 + $0x220] ss:$8 sps:$4 sm:$0xff]  }
  0x10   :  { %1121 = vmatprep.subr.bf16.mxu0 %v3343_v8  ;;  %1072 = vmatprep.subr.bf16.mxu1 %v3484_v42  ;;  %v3393_v45 = vld [vmem:[%s4939_s1 + $0x234] ss:$8 sps:$4 sm:$0xff]   ;;  %v3493_v46 = vld [vmem:[%s4939_s1 + $0x24] ss:$8 sps:$4 sm:$0xff]   ;;  %v3495_v47 = vld [vmem:[%s4939_s1 + $0x20] ss:$8 sps:$4 sm:$0xff]  }
  0x11   :  { %v3391_v48 = vld [vmem:[%s4939_s1 + $0x230] ss:$8 sps:$4 sm:$0xff]   ;;  %v3499_v49 = vld [vmem:[%s4939_s1 + $0x34] ss:$8 sps:$4 sm:$0xff]   ;;  %v3396_v50 = vld [vmem:[%s4939_s1 + $0x244] ss:$8 sps:$4 sm:$0xff]  }
  0x12   :  { %v3501_v51 = vld [vmem:[%s4939_s1 + $0x30] ss:$8 sps:$4 sm:$0xff]   ;;  %v3505_v52 = vld [vmem:[%s4939_s1 + $0x44] ss:$8 sps:$4 sm:$0xff]   ;;  %v3394_v53 = vld [vmem:[%s4939_s1 + $0x240] ss:$8 sps:$4 sm:$0xff]  }
  0x13   :  { %1122 = vmatpush1.bf16.msra.mxu0 %v3345_v9  ;;  %1073 = vmatpush1.bf16.msra.mxu1 %v3486_v43  ;;  %v3399_v54 = vld [vmem:[%s4939_s1 + $0x254] ss:$8 sps:$4 sm:$0xff]   ;;  %v3507_v55 = vld [vmem:[%s4939_s1 + $0x40] ss:$8 sps:$4 sm:$0xff]   ;;  %v3397_v57 = vld [vmem:[%s4939_s1 + $0x250] ss:$8 sps:$4 sm:$0xff]  }
  0x14   :  { %1123 = vmatprep.subr.bf16.mxu0 %v3346_v10  ;;  %1074 = vmatprep.subr.bf16.mxu1 %v3493_v46  ;;  %v3511_v56 = vld [vmem:[%s4939_s1 + $0x54] ss:$8 sps:$4 sm:$0xff]   ;;  %v3402_v58 = vld [vmem:[%s4939_s1 + $0x264] ss:$8 sps:$4 sm:$0xff]   ;;  %v3513_v59 = vld [vmem:[%s4939_s1 + $0x50] ss:$8 sps:$4 sm:$0xff]  }
  0x15   :  { %v3517_v60 = vld [vmem:[%s4939_s1 + $0x64] ss:$8 sps:$4 sm:$0xff]   ;;  %v3400_v61 = vld [vmem:[%s4939_s1 + $0x260] ss:$8 sps:$4 sm:$0xff]   ;;  %v3405_v62 = vld [vmem:[%s4939_s1 + $0x274] ss:$8 sps:$4 sm:$0xff]  }
  0x16   :  { %v3519_v63 = vld [vmem:[%s4939_s1 + $0x60] ss:$8 sps:$4 sm:$0xff]   ;;  %v3523_v0 = vld [vmem:[%s4939_s1 + $0x74] ss:$8 sps:$4 sm:$0xff]   ;;  %v3403_v1 = vld [vmem:[%s4939_s1 + $0x270] ss:$8 sps:$4 sm:$0xff]  }
  0x17   :  { %1124 = vmatpush1.bf16.msra.mxu0 %v3348_v11  ;;  %1075 = vmatpush1.bf16.msra.mxu1 %v3495_v47  ;;  %v3408_v2 = vld [vmem:[%s4939_s1 + $0x284] ss:$8 sps:$4 sm:$0xff]   ;;  %v3525_v3 = vld [vmem:[%s4939_s1 + $0x70] ss:$8 sps:$4 sm:$0xff]   ;;  %v3406_v5 = vld [vmem:[%s4939_s1 + $0x280] ss:$8 sps:$4 sm:$0xff]  }
  0x18   :  { %1125 = vmatprep.subr.bf16.mxu0 %v3349_v12  ;;  %1076 = vmatprep.subr.bf16.mxu1 %v3499_v49  ;;  %v3529_v4 = vld [vmem:[%s4939_s1 + $0x84] ss:$8 sps:$4 sm:$0xff]   ;;  %v3411_v6 = vld [vmem:[%s4939_s1 + $0x294] ss:$8 sps:$4 sm:$0xff]   ;;  %v3531_v7 = vld [vmem:[%s4939_s1 + $0x80] ss:$8 sps:$4 sm:$0xff]  }
  0x19   :  { %v3535_v8 = vld [vmem:[%s4939_s1 + $0x94] ss:$8 sps:$4 sm:$0xff]   ;;  %v3409_v9 = vld [vmem:[%s4939_s1 + $0x290] ss:$8 sps:$4 sm:$0xff]   ;;  %v3414_v10 = vld [vmem:[%s4939_s1 + $0x2a4] ss:$8 sps:$4 sm:$0xff]  }
  0x1a   :  { %v3537_v11 = vld [vmem:[%s4939_s1 + $0x90] ss:$8 sps:$4 sm:$0xff]   ;;  %v3541_v12 = vld [vmem:[%s4939_s1 + $0xa4] ss:$8 sps:$4 sm:$0xff]   ;;  %v3412_v13 = vld [vmem:[%s4939_s1 + $0x2a0] ss:$8 sps:$4 sm:$0xff]  }
  0x1b   :  { %1126 = vmatpush1.bf16.msra.mxu0 %v3351_v14  ;;  %1077 = vmatpush1.bf16.msra.mxu1 %v3501_v51  ;;  %v3417_v14 = vld [vmem:[%s4939_s1 + $0x2b4] ss:$8 sps:$4 sm:$0xff]   ;;  %v3433_v38 = vld [vmem:[%s4939_s1 + $0x300] ss:$8 sps:$4 sm:$0xff]   ;;  %v3436_v42 = vld [vmem:[%s4939_s1 + $0x310] ss:$8 sps:$4 sm:$0xff]  }
  0x1c   :  { %1127 = vmatprep.subr.bf16.mxu0 %v3352_v15  ;;  %1078 = vmatprep.subr.bf16.mxu1 %v3505_v52  ;;  %v3543_v15 = vld [vmem:[%s4939_s1 + $0xa0] ss:$8 sps:$4 sm:$0xff]   ;;  %v3489_v39 = vld [vmem:[%s4940_s0 + $0x1c] ss:$40 sps:$4 sm:$0xff]   ;;  %v1307_v49 = vld [vmem:[%s4941_s3 + $0x90] sm:$0xff] }
  0x1d   :  { %v3441_v43 = vld [vmem:[%s4939_s1 + $0x324] ss:$8 sps:$4 sm:$0xff]  }
  0x1e   :  { %v1289_v46 = vld [vmem:[%s4941_s3] sm:$0xff] }
  0x1f   :  { %1128 = vmatpush1.bf16.msra.mxu0 %v3354_v16  ;;  %1079 = vmatpush1.bf16.msra.mxu1 %v3507_v55  ;;  %v3547_v16 = vld [vmem:[%s4939_s1 + $0xb4] ss:$8 sps:$4 sm:$0xff]   ;;  %v1309_v55 = vld [vmem:[%s4941_s3 + $0xa0] sm:$0xff] }
  0x20   :  { %1129 = vmatprep.subr.bf16.mxu0 %v3355_v17  ;;  %1080 = vmatprep.subr.bf16.mxu1 %v3511_v56  ;;  %v3415_v17 = vld [vmem:[%s4939_s1 + $0x2b0] ss:$8 sps:$4 sm:$0xff]   ;;  %v1310_v56 = vld [vmem:[%s4941_s3 + $0xa8] sm:$0xff] }
  0x23   :  { %1130 = vmatpush1.bf16.msra.mxu0 %v3357_v18  ;;  %1081 = vmatpush1.bf16.msra.mxu1 %v3513_v59  ;;  %v3420_v18 = vld [vmem:[%s4939_s1 + $0x2c4] ss:$8 sps:$4 sm:$0xff]   ;;  %v3444_v59 = vld [vmem:[%s4939_s1 + $0x334] ss:$8 sps:$4 sm:$0xff]  }
  0x24   :  { %1131 = vmatprep.subr.bf16.mxu0 %v3358_v19  ;;  %1082 = vmatprep.subr.bf16.mxu1 %v3517_v60  ;;  %v3549_v19 = vld [vmem:[%s4939_s1 + $0xb0] ss:$8 sps:$4 sm:$0xff]   ;;  %v3109_v60 = vpack.c.bf16 %v1310_v56, %v1309_v55 }
  0x25   :  { %v1316_v55 = vld [vmem:[%s4941_s3 + $0xd8] sm:$0xff] }
  0x27   :  { %1132 = vmatpush1.bf16.msra.mxu0 %v3360_v20  ;;  %1083 = vmatpush1.bf16.msra.mxu1 %v3519_v63  ;;  %v3553_v20 = vld [vmem:[%s4939_s1 + $0xc4] ss:$8 sps:$4 sm:$0xff]   ;;  %v1311_v63 = vld [vmem:[%s4941_s3 + $0xb0] sm:$0xff] }
  0x28   :  { %1133 = vmatprep.subr.bf16.mxu0 %v3361_v21  ;;  %1084 = vmatprep.subr.bf16.mxu1 %v3523_v0  ;;  %v3418_v21 = vld [vmem:[%s4939_s1 + $0x2c0] ss:$8 sps:$4 sm:$0xff]   ;;  %v1312_v0 = vld [vmem:[%s4941_s3 + $0xb8] sm:$0xff] }
  0x2b   :  { %1134 = vmatpush1.bf16.msra.mxu0 %v3363_v22  ;;  %1085 = vmatpush1.bf16.msra.mxu1 %v3525_v3  ;;  %v3423_v22 = vld [vmem:[%s4939_s1 + $0x2d4] ss:$8 sps:$4 sm:$0xff]   ;;  %v3447_v3 = vld [vmem:[%s4939_s1 + $0x344] ss:$8 sps:$4 sm:$0xff]  }
  0x2c   :  { %1135 = vmatprep.subr.bf16.mxu0 %v3364_v23  ;;  %1086 = vmatprep.subr.bf16.mxu1 %v3529_v4  ;;  %v3555_v23 = vld [vmem:[%s4939_s1 + $0xc0] ss:$8 sps:$4 sm:$0xff]   ;;  %v3113_v4 = vpack.c.bf16 %v1312_v0, %v1311_v63  ;;  %v3540_v63 = vld [vmem:[%s4939_s1 + $0x484] ss:$8 sps:$4 sm:$0xff]  }
  0x2f   :  { %1136 = vmatpush1.bf16.msra.mxu0 %v3366_v24  ;;  %1087 = vmatpush1.bf16.msra.mxu1 %v3531_v7  ;;  %v3559_v24 = vld [vmem:[%s4939_s1 + $0xd4] ss:$8 sps:$4 sm:$0xff]   ;;  %v1313_v7 = vld [vmem:[%s4941_s3 + $0xc0] sm:$0xff] }
  0x30   :  { %1137 = vmatprep.subr.bf16.mxu0 %v3367_v25  ;;  %1088 = vmatprep.subr.bf16.mxu1 %v3535_v8  ;;  %v3421_v25 = vld [vmem:[%s4939_s1 + $0x2d0] ss:$8 sps:$4 sm:$0xff]   ;;  %v1314_v8 = vld [vmem:[%s4941_s3 + $0xc8] sm:$0xff] }
  0x33   :  { %1138 = vmatpush1.bf16.msra.mxu0 %v3369_v26  ;;  %1089 = vmatpush1.bf16.msra.mxu1 %v3537_v11  ;;  %v3426_v26 = vld [vmem:[%s4939_s1 + $0x2e4] ss:$8 sps:$4 sm:$0xff]   ;;  %v3450_v11 = vld [vmem:[%s4939_s1 + $0x354] ss:$8 sps:$4 sm:$0xff]  }
  0x34   :  { %1139 = vmatprep.subr.bf16.mxu0 %v3370_v27  ;;  %1090 = vmatprep.subr.bf16.mxu1 %v3541_v12  ;;  %v3561_v27 = vld [vmem:[%s4939_s1 + $0xd0] ss:$8 sps:$4 sm:$0xff]   ;;  %v3117_v12 = vpack.c.bf16 %v1314_v8, %v1313_v7  ;;  %v3564_v8 = vld [vmem:[%s4939_s1 + $0x4c4] ss:$8 sps:$4 sm:$0xff]  }
  0x35   :  { %v3556_v7 = vld [vmem:[%s4939_s1 + $0x4b0] ss:$8 sps:$4 sm:$0xff]  }
  0x37   :  { %1140 = vmatpush1.bf16.msra.mxu0 %v3372_v28  ;;  %1091 = vmatpush1.bf16.msra.mxu1 %v3543_v15  ;;  %v3565_v28 = vld [vmem:[%s4939_s1 + $0xe4] ss:$8 sps:$4 sm:$0xff]   ;;  %v3448_v15 = vld [vmem:[%s4939_s1 + $0x350] ss:$8 sps:$4 sm:$0xff]  }
  0x38   :  { %1141 = vmatprep.subr.bf16.mxu0 %v3373_v29  ;;  %1092 = vmatprep.subr.bf16.mxu1 %v3547_v16  ;;  %v3424_v29 = vld [vmem:[%s4939_s1 + $0x2e0] ss:$8 sps:$4 sm:$0xff]  }
  0x3b   :  { %1142 = vmatpush1.bf16.msra.mxu0 %v3375_v30  ;;  %1093 = vmatpush1.bf16.msra.mxu1 %v3549_v19  ;;  %v3429_v30 = vld [vmem:[%s4939_s1 + $0x2f4] ss:$8 sps:$4 sm:$0xff]  }
  0x3c   :  { %1143 = vmatprep.subr.bf16.mxu0 %v3376_v31  ;;  %1094 = vmatprep.subr.bf16.mxu1 %v3553_v20  ;;  %v3567_v31 = vld [vmem:[%s4939_s1 + $0xe0] ss:$8 sps:$4 sm:$0xff]   ;;  %v3456_v19 = vld [vmem:[%s4939_s1 + $0x374] ss:$8 sps:$4 sm:$0xff]   ;;  %v3454_v20 = vld [vmem:[%s4939_s1 + $0x370] ss:$8 sps:$4 sm:$0xff]  }
  0x3f   :  { %1144 = vmatpush1.bf16.msra.mxu0 %v3378_v32  ;;  %1095 = vmatpush1.bf16.msra.mxu1 %v3555_v23  ;;  %v3571_v32 = vld [vmem:[%s4939_s1 + $0xf4] ss:$8 sps:$4 sm:$0xff]  }
  0x40   :  { %1156 = vmatprep.subr.bf16.mxu0 %v3384_v33  ;;  %1096 = vmatprep.subr.bf16.mxu1 %v3559_v24  ;;  %v3579_v33 = vld [vmem:[%s4940_s0 + $0x4] ss:$40 sps:$4 sm:$0xff]   ;;  %v3462_v23 = vld [vmem:[%s4939_s1 + $0x394] ss:$8 sps:$4 sm:$0xff]   ;;  %v3460_v24 = vld [vmem:[%s4939_s1 + $0x390] ss:$8 sps:$4 sm:$0xff]  }
  0x41   :  { %1102 = vmatprep.mubr.bf16.mxu1 %v3579_v33  ;;  %v3477_v33 = vld [vmem:[%s4939_s1 + $0x3e4] ss:$8 sps:$4 sm:$0xff]  }
  0x42   :  { %1146 = vmatmul.mubr.bf16.vlgmr.msra.gmra.mrb[0].mxu0 %v3379_v34  ;;  %v3427_v34 = vld [vmem:[%s4939_s1 + $0x2f0] ss:$8 sps:$4 sm:$0xff]  }
  0x43   :  { %1157 = vmatpush1.bf16.msra.mxu0 %v3382_v35  ;;  %1188 = vmatprep.mubr.bf16.mxu0 %v3432_v36  ;;  %v3435_v35 = vld [vmem:[%s4939_s1 + $0x304] ss:$8 sps:$4 sm:$0xff]   ;;  %v3573_v36 = vld [vmem:[%s4939_s1 + $0xf0] ss:$8 sps:$4 sm:$0xff]  }
  0x44   :  { %1158 = vmatprep.subr.bf16.mxu0 %v3387_v37  ;;  %1097 = vmatpush1.bf16.msra.mxu1 %v3561_v27  ;;  %v3430_v37 = vld [vmem:[%s4940_s0 + $0x10] ss:$40 sps:$4 sm:$0xff]   ;;  %v3468_v27 = vld [vmem:[%s4939_s1 + $0x3b4] ss:$8 sps:$4 sm:$0xff]  }
  0x45   :  { %1098 = vmatprep.subr.bf16.mxu1 %v3565_v28  ;;  %v3466_v28 = vld [vmem:[%s4939_s1 + $0x3b0] ss:$8 sps:$4 sm:$0xff]  }
  0x47   :  { %1159 = vmatpush1.bf16.msra.mxu0 %v3385_v40  ;;  %v3438_v40 = vld [vmem:[%s4939_s1 + $0x314] ss:$8 sps:$4 sm:$0xff]  }
  0x48   :  { %1160 = vmatprep.subr.bf16.mxu0 %v3390_v41  ;;  %1099 = vmatpush1.bf16.msra.mxu1 %v3567_v31  ;;  %v3577_v41 = vld [vmem:[%s4940_s0] ss:$40 sps:$4 sm:$0xff]   ;;  %v3474_v31 = vld [vmem:[%s4939_s1 + $0x3d4] ss:$8 sps:$4 sm:$0xff]  }
  0x49   :  { %1100 = vmatprep.subr.bf16.mxu1 %v3571_v32  ;;  %v3472_v32 = vld [vmem:[%s4939_s1 + $0x3d0] ss:$8 sps:$4 sm:$0xff]  }
  0x4b   :  { %1161 = vmatpush1.bf16.msra.mxu0 %v3388_v44  ;;  %v1305_v44 = vld [vmem:[%s4941_s3 + $0x80] sm:$0xff] }
  0x4c   :  { %1162 = vmatprep.subr.bf16.mxu0 %v3393_v45  ;;  %1101 = vmatpush1.bf16.msra.mxu1 %v3573_v36  ;;  %v1306_v45 = vld [vmem:[%s4941_s3 + $0x88] sm:$0xff]  ;;  %v3481_v36 = vld [vmem:[%s4939_s1 + $0x3f0] ss:$8 sps:$4 sm:$0xff]  }
  0x4d   :  { %v3101_v47 = vpack.c.bf16 %v1306_v45, %v1305_v44  ;;  %v3502_v44 = vld [vmem:[%s4939_s1 + $0x420] ss:$8 sps:$4 sm:$0xff]   ;;  %v3510_v45 = vld [vmem:[%s4939_s1 + $0x434] ss:$8 sps:$4 sm:$0xff]  }
  0x4f   :  { %1163 = vmatpush1.bf16.msra.mxu0 %v3391_v48  ;;  %1103 = vmatmul.mubr.bf16.vlgmr.msra.gmra.mrb[0].mxu1 %v3577_v41  ;;  %v1290_v48 = vld [vmem:[%s4941_s3 + $0x8] sm:$0xff]  ;;  %v3498_v41 = vld [vmem:[%s4939_s1 + $0x414] ss:$8 sps:$4 sm:$0xff]  }
  0x50   :  { %1164 = vmatprep.subr.bf16.mxu0 %v3396_v50  ;;  %v1308_v50 = vld [vmem:[%s4941_s3 + $0x98] sm:$0xff]  ;;  %v3103_v51 = vpack.c.bf16 %v1290_v48, %v1289_v46  ;;  %3102 = vmatprep.subr.bf16.mxu1 %v3101_v47  ;;  %v3516_v47 = vld [vmem:[%s4939_s1 + $0x444] ss:$8 sps:$4 sm:$0xff]   ;;  %v3514_v48 = vld [vmem:[%s4939_s1 + $0x440] ss:$8 sps:$4 sm:$0xff]  }
  0x51   :  { %v3105_v52 = vpack.c.bf16 %v1308_v50, %v1307_v49  ;;  %v3508_v46 = vld [vmem:[%s4939_s1 + $0x430] ss:$8 sps:$4 sm:$0xff]   ;;  %v3522_v49 = vld [vmem:[%s4939_s1 + $0x454] ss:$8 sps:$4 sm:$0xff]  }
  0x52   :  { %3104 = vmatpush3.bf16.msra.mxu1 %v3103_v51  ;;  %v3520_v50 = vld [vmem:[%s4939_s1 + $0x450] ss:$8 sps:$4 sm:$0xff]   ;;  %v3528_v51 = vld [vmem:[%s4939_s1 + $0x464] ss:$8 sps:$4 sm:$0xff]  }
  0x53   :  { %1165 = vmatpush1.bf16.msra.mxu0 %v3394_v53  ;;  %v1291_v53 = vld [vmem:[%s4941_s3 + $0x10] sm:$0xff]  ;;  %3106 = vmatprep.subr.bf16.mxu1 %v3105_v52  ;;  %v3526_v52 = vld [vmem:[%s4939_s1 + $0x460] ss:$8 sps:$4 sm:$0xff]  }
  0x54   :  { %1166 = vmatprep.subr.bf16.mxu0 %v3399_v54  ;;  %v1292_v54 = vld [vmem:[%s4941_s3 + $0x18] sm:$0xff] }
  0x57   :  { %1167 = vmatpush1.bf16.msra.mxu0 %v3397_v57  ;;  %v3439_v57 = vld [vmem:[%s4939_s1 + $0x320] ss:$8 sps:$4 sm:$0xff]  }
  0x58   :  { %1168 = vmatprep.subr.bf16.mxu0 %v3402_v58  ;;  %v3107_v58 = vpack.c.bf16 %v1292_v54, %v1291_v53  ;;  %v3534_v53 = vld [vmem:[%s4939_s1 + $0x474] ss:$8 sps:$4 sm:$0xff]  }
  0x59   :  { %v1315_v54 = vld [vmem:[%s4941_s3 + $0xd0] sm:$0xff] }
  0x5a   :  { %3108 = vmatpush3.bf16.msra.mxu1 %v3107_v58  ;;  %v3121_v56 = vpack.c.bf16 %v1316_v55, %v1315_v54  ;;  %v1300_v58 = vld [vmem:[%s4941_s3 + $0x58] sm:$0xff]  ;;  %v3607_v54 = vmov 0   ;;  %v2795_v55 = vld [vmem:[%s4941_s3 + $0x180] sm:$0xff] }
  0x5b   :  { %1169 = vmatpush1.bf16.msra.mxu0 %v3400_v61  ;;  %v1293_v61 = vld [vmem:[%s4941_s3 + $0x20] sm:$0xff]  ;;  %3110 = vmatprep.subr.bf16.mxu1 %v3109_v60  ;;  %v3532_v60 = vld [vmem:[%s4939_s1 + $0x470] ss:$8 sps:$4 sm:$0xff]  }
  0x5c   :  { %1170 = vmatprep.subr.bf16.mxu0 %v3405_v62  ;;  %v1294_v62 = vld [vmem:[%s4941_s3 + $0x28] sm:$0xff]  ;;  %3301 = vset.pattern.permute.xlu0 %v3607_v54 }
  0x5f   :  { %1171 = vmatpush1.bf16.msra.mxu0 %v3403_v1  ;;  %v3442_v1 = vld [vmem:[%s4939_s1 + $0x330] ss:$8 sps:$4 sm:$0xff]  }
  0x60   :  { %1172 = vmatprep.subr.bf16.mxu0 %v3408_v2  ;;  %v3111_v2 = vpack.c.bf16 %v1294_v62, %v1293_v61  ;;  %v1317_v61 = vld [vmem:[%s4941_s3 + $0xe0] sm:$0xff]  ;;  %v1318_v62 = vld [vmem:[%s4941_s3 + $0xe8] sm:$0xff] }
  0x61   :  { %v3125_v0 = vpack.c.bf16 %v1318_v62, %v1317_v61  ;;  %v2798_v61 = vld [vmem:[%s4941_s3 + $0x198] sm:$0xff] }
  0x62   :  { %3112 = vmatpush3.bf16.msra.mxu1 %v3111_v2  ;;  %v3546_v2 = vld [vmem:[%s4939_s1 + $0x494] ss:$8 sps:$4 sm:$0xff]  }
  0x63   :  { %1173 = vmatpush1.bf16.msra.mxu0 %v3406_v5  ;;  %v1295_v5 = vld [vmem:[%s4941_s3 + $0x30] sm:$0xff]  ;;  %3114 = vmatprep.subr.bf16.mxu1 %v3113_v4  ;;  %v3552_v4 = vld [vmem:[%s4939_s1 + $0x4a4] ss:$8 sps:$4 sm:$0xff]  }
  0x64   :  { %1174 = vmatprep.subr.bf16.mxu0 %v3411_v6  ;;  %v1296_v6 = vld [vmem:[%s4941_s3 + $0x38] sm:$0xff] }
  0x67   :  { %1175 = vmatpush1.bf16.msra.mxu0 %v3409_v9  ;;  %v3445_v9 = vld [vmem:[%s4939_s1 + $0x340] ss:$8 sps:$4 sm:$0xff]  }
  0x68   :  { %1176 = vmatprep.subr.bf16.mxu0 %v3414_v10  ;;  %v3115_v10 = vpack.c.bf16 %v1296_v6, %v1295_v5  ;;  %v3550_v5 = vld [vmem:[%s4939_s1 + $0x4a0] ss:$8 sps:$4 sm:$0xff]   ;;  %v3558_v6 = vld [vmem:[%s4939_s1 + $0x4b4] ss:$8 sps:$4 sm:$0xff]  }
  0x6a   :  { %3116 = vmatpush3.bf16.msra.mxu1 %v3115_v10  ;;  %v3570_v10 = vld [vmem:[%s4939_s1 + $0x4d4] ss:$8 sps:$4 sm:$0xff]  }
  0x6b   :  { %1177 = vmatpush1.bf16.msra.mxu0 %v3412_v13  ;;  %v1297_v13 = vld [vmem:[%s4941_s3 + $0x40] sm:$0xff]  ;;  %3118 = vmatprep.subr.bf16.mxu1 %v3117_v12 }
  0x6c   :  { %1178 = vmatprep.subr.bf16.mxu0 %v3417_v14  ;;  %v1298_v14 = vld [vmem:[%s4941_s3 + $0x48] sm:$0xff] }
  0x6d   :  { %v3119_v16 = vpack.c.bf16 %v1298_v14, %v1297_v13  ;;  %v3576_v12 = vld [vmem:[%s4939_s1 + $0x4e4] ss:$8 sps:$4 sm:$0xff]   ;;  %v3574_v13 = vld [vmem:[%s4939_s1 + $0x4e0] ss:$8 sps:$4 sm:$0xff]   ;;  %v3582_v14 = vld [vmem:[%s4939_s1 + $0x4f4] ss:$8 sps:$4 sm:$0xff]  }
  0x6f   :  { %1179 = vmatpush1.bf16.msra.mxu0 %v3415_v17  ;;  %v3453_v17 = vld [vmem:[%s4939_s1 + $0x364] ss:$8 sps:$4 sm:$0xff]   ;;  %3120 = vmatpush3.bf16.msra.mxu1 %v3119_v16  ;;  %v3583_v16 = vld [vmem:[%s4940_s0 + $0x20] ss:$40 sps:$4 sm:$0xff]  }
  0x70   :  { %1180 = vmatprep.subr.bf16.mxu0 %v3420_v18  ;;  %v3451_v18 = vld [vmem:[%s4939_s1 + $0x360] ss:$8 sps:$4 sm:$0xff]   ;;  %3122 = vmatprep.subr.bf16.mxu1 %v3121_v56 }
  0x71   :  { %v2796_v56 = vld [vmem:[%s4941_s3 + $0x188] sm:$0xff] }
  0x73   :  { %1181 = vmatpush1.bf16.msra.mxu0 %v3418_v21  ;;  %v3459_v21 = vld [vmem:[%s4939_s1 + $0x384] ss:$8 sps:$4 sm:$0xff]  }
  0x74   :  { %1182 = vmatprep.subr.bf16.mxu0 %v3423_v22  ;;  %v3457_v22 = vld [vmem:[%s4939_s1 + $0x380] ss:$8 sps:$4 sm:$0xff]  }
  0x77   :  { %1183 = vmatpush1.bf16.msra.mxu0 %v3421_v25  ;;  %v3465_v25 = vld [vmem:[%s4939_s1 + $0x3a4] ss:$8 sps:$4 sm:$0xff]  }
  0x78   :  { %1184 = vmatprep.subr.bf16.mxu0 %v3426_v26  ;;  %v3463_v26 = vld [vmem:[%s4939_s1 + $0x3a0] ss:$8 sps:$4 sm:$0xff]  }
  0x7b   :  { %1185 = vmatpush1.bf16.msra.mxu0 %v3424_v29  ;;  %v3471_v29 = vld [vmem:[%s4939_s1 + $0x3c4] ss:$8 sps:$4 sm:$0xff]  }
  0x7c   :  { %1186 = vmatprep.subr.bf16.mxu0 %v3429_v30  ;;  %v3469_v30 = vld [vmem:[%s4939_s1 + $0x3c0] ss:$8 sps:$4 sm:$0xff]  }
  0x7f   :  { %1187 = vmatpush1.bf16.msra.mxu0 %v3427_v34  ;;  %v3475_v34 = vld [vmem:[%s4939_s1 + $0x3e0] ss:$8 sps:$4 sm:$0xff]  }
  0x80   :  { %1199 = vmatprep.subr.bf16.mxu0 %v3435_v35  ;;  %v3483_v35 = vld [vmem:[%s4939_s1 + $0x3f4] ss:$8 sps:$4 sm:$0xff]  }
  0x82   :  { %1189 = vmatmul.mubr.bf16.vlgmr.msra.gmra.mrb[0].mxu0 %v3430_v37  ;;  %v3492_v37 = vld [vmem:[%s4939_s1 + $0x404] ss:$8 sps:$4 sm:$0xff]  }
  0x83   :  { %1200 = vmatpush1.bf16.msra.mxu0 %v3433_v38  ;;  %1231 = vmatprep.mubr.bf16.mxu0 %v3489_v39  ;;  %v3487_v38 = vld [vmem:[%s4940_s0 + $0x18] ss:$40 sps:$4 sm:$0xff]  }
  0x84   :  { %1201 = vmatprep.subr.bf16.mxu0 %v3438_v40  ;;  %v3490_v39 = vld [vmem:[%s4939_s1 + $0x400] ss:$8 sps:$4 sm:$0xff]   ;;  %v3585_v40 = vld [vmem:[%s4940_s0 + $0x24] ss:$40 sps:$4 sm:$0xff]  }
  0x87   :  { %1202 = vmatpush1.bf16.msra.mxu0 %v3436_v42  ;;  %v3496_v42 = vld [vmem:[%s4939_s1 + $0x410] ss:$8 sps:$4 sm:$0xff]  }
  0x88   :  { %1203 = vmatprep.subr.bf16.mxu0 %v3441_v43  ;;  %v3504_v43 = vld [vmem:[%s4939_s1 + $0x424] ss:$8 sps:$4 sm:$0xff]  }
  0x8b   :  { %1204 = vmatpush1.bf16.msra.mxu0 %v3439_v57  ;;  %v1299_v57 = vld [vmem:[%s4941_s3 + $0x50] sm:$0xff] }
  0x8c   :  { %1205 = vmatprep.subr.bf16.mxu0 %v3444_v59  ;;  %v3123_v59 = vpack.c.bf16 %v1300_v58, %v1299_v57  ;;  %v2779_v57 = vld [vmem:[%s4941_s3 + $0x100] sm:$0xff]  ;;  %v3133_v58 = vpack.c.bf16 %v2796_v56, %v2795_v55  ;;  %v3608_v56 = vmov 1  }
  0x8e   :  { %3124 = vmatpush3.bf16.msra.mxu1 %v3123_v59  ;;  %v2780_v59 = vld [vmem:[%s4941_s3 + $0x108] sm:$0xff] }
  0x8f   :  { %1206 = vmatpush1.bf16.msra.mxu0 %v3442_v1  ;;  %3126 = vmatprep.subr.bf16.mxu1 %v3125_v0  ;;  %v3538_v1 = vld [vmem:[%s4939_s1 + $0x480] ss:$8 sps:$4 sm:$0xff]   ;;  %v3135_v62 = vpack.c.bf16 %v2780_v59, %v2779_v57  ;;  %v2781_v0 = vld [vmem:[%s4941_s3 + $0x110] sm:$0xff] }
  0x90   :  { %1207 = vmatprep.subr.bf16.mxu0 %v3447_v3  ;;  %v3544_v3 = vld [vmem:[%s4939_s1 + $0x490] ss:$8 sps:$4 sm:$0xff]   ;;  %v2807_v57 = vld [vmem:[%s4941_s3 + $0x1e0] sm:$0xff] }
  0x93   :  { %1208 = vmatpush1.bf16.msra.mxu0 %v3445_v9  ;;  %v3562_v9 = vld [vmem:[%s4939_s1 + $0x4c0] ss:$8 sps:$4 sm:$0xff]  }
  0x94   :  { %1209 = vmatprep.subr.bf16.mxu0 %v3450_v11  ;;  %v3568_v11 = vld [vmem:[%s4939_s1 + $0x4d0] ss:$8 sps:$4 sm:$0xff]  }
  0x97   :  { %1210 = vmatpush1.bf16.msra.mxu0 %v3448_v15  ;;  %v3580_v15 = vld [vmem:[%s4939_s1 + $0x4f0] ss:$8 sps:$4 sm:$0xff]  }
  0x98   :  { %1211 = vmatprep.subr.bf16.mxu0 %v3453_v17  ;;  %v1301_v17 = vld [vmem:[%s4941_s3 + $0x60] sm:$0xff] }
  0x9b   :  { %1212 = vmatpush1.bf16.msra.mxu0 %v3451_v18  ;;  %v1302_v18 = vld [vmem:[%s4941_s3 + $0x68] sm:$0xff] }
  0x9c   :  { %1213 = vmatprep.subr.bf16.mxu0 %v3456_v19  ;;  %v3127_v19 = vpack.c.bf16 %v1302_v18, %v1301_v17 }
  0x9e   :  { %3128 = vmatpush3.bf16.msra.mxu1 %v3127_v19 }
  0x9f   :  { %1214 = vmatpush1.bf16.msra.mxu0 %v3454_v20  ;;  %v1319_v20 = vld [vmem:[%s4941_s3 + $0xf0] sm:$0xff] }
  0xa0   :  { %1215 = vmatprep.subr.bf16.mxu0 %v3459_v21  ;;  %v1320_v21 = vld [vmem:[%s4941_s3 + $0xf8] sm:$0xff] }
  0xa3   :  { %1216 = vmatpush1.bf16.msra.mxu0 %v3457_v22  ;;  %v3129_v22 = vpack.c.bf16 %v1320_v21, %v1319_v20 }
  0xa4   :  { %1217 = vmatprep.subr.bf16.mxu0 %v3462_v23  ;;  %v1303_v23 = vld [vmem:[%s4941_s3 + $0x70] sm:$0xff] }
  0xa5   :  { %3130 = vmatprep.subr.bf16.mxu1 %v3129_v22 }
  0xa7   :  { %1218 = vmatpush1.bf16.msra.mxu0 %v3460_v24  ;;  %v1304_v24 = vld [vmem:[%s4941_s3 + $0x78] sm:$0xff] }
  0xa8   :  { %1219 = vmatprep.subr.bf16.mxu0 %v3465_v25 }
  0xab   :  { %1220 = vmatpush1.bf16.msra.mxu0 %v3463_v26  ;;  %v3131_v26 = vpack.c.bf16 %v1304_v24, %v1303_v23 }
  0xac   :  { %1221 = vmatprep.subr.bf16.mxu0 %v3468_v27 }
  0xad   :  { %3132 = vmatpush3.bf16.msra.mxu1 %v3131_v26 }
  0xae   :  { %3134 = vmatprep.subr.bf16.mxu1 %v3133_v58  ;;  %v2808_v58 = vld [vmem:[%s4941_s3 + $0x1e8] sm:$0xff] }
  0xaf   :  { %1222 = vmatpush1.bf16.msra.mxu0 %v3466_v28  ;;  %v3157_v59 = vpack.c.bf16 %v2808_v58, %v2807_v57 }
  0xb0   :  { %1223 = vmatprep.subr.bf16.mxu0 %v3471_v29 }
  0xb3   :  { %1224 = vmatpush1.bf16.msra.mxu0 %v3469_v30  ;;  %v210_v30 = vlaneseq }
  0xb4   :  { %1225 = vmatprep.subr.bf16.mxu0 %v3474_v31 }
  0xb5   :  { %v4276_v31 = vshrl.u32 %v210_v30, 7  ;;  %v2788_v30 = vld [vmem:[%s4941_s3 + $0x148] sm:$0xff] }
  0xb7   :  { %1226 = vmatpush1.bf16.msra.mxu0 %v3472_v32  ;;  %v4279_v32 = vsub.s32 0, %v4276_v31 }
  0xb8   :  { %1227 = vmatprep.subr.bf16.mxu0 %v3477_v33  ;;  %v208_v33 = vld [vmem:[%s4942_s2] sm:$0x3] }
  0xbb   :  { %1228 = vmatpush1.bf16.msra.mxu0 %v3475_v34  ;;  %v4285_v34 = vsub.s32 1, %v4276_v31 }
  0xbc   :  { %1229 = vmatprep.subr.bf16.mxu0 %v3483_v35  ;;  %v213_v35 = vrot.slane %v208_v33, %v4279_v32 }
  0xbf   :  { %1230 = vmatpush1.bf16.msra.mxu0 %v3481_v36  ;;  %v217_v36 = vrot.slane %v208_v33, %v4285_v34 }
  0xc0   :  { %1242 = vmatprep.subr.bf16.mxu0 %v3492_v37 }
  0xc2   :  { %1232 = vmatmul.mubr.bf16.vlgmr.msra.gmra.mrb[0].mxu0 %v3487_v38 }
  0xc3   :  { %1243 = vmatpush1.bf16.msra.mxu0 %v3490_v39  ;;  %1274 = vmatprep.mubr.bf16.mxu0 %v3585_v40 }
  0xc4   :  { %1244 = vmatprep.subr.bf16.mxu0 %v3498_v41 }
  0xc7   :  { %1245 = vmatpush1.bf16.msra.mxu0 %v3496_v42 }
  0xc8   :  { %1246 = vmatprep.subr.bf16.mxu0 %v3504_v43 }
  0xcb   :  { %1247 = vmatpush1.bf16.msra.mxu0 %v3502_v44 }
  0xcc   :  { %1248 = vmatprep.subr.bf16.mxu0 %v3510_v45 }
  0xcf   :  { %1249 = vmatpush1.bf16.msra.mxu0 %v3508_v46 }
  0xd0   :  { %1250 = vmatprep.subr.bf16.mxu0 %v3516_v47 }
  0xd3   :  { %1251 = vmatpush1.bf16.msra.mxu0 %v3514_v48 }
  0xd4   :  { %1252 = vmatprep.subr.bf16.mxu0 %v3522_v49 }
  0xd7   :  { %1253 = vmatpush1.bf16.msra.mxu0 %v3520_v50 }
  0xd8   :  { %1254 = vmatprep.subr.bf16.mxu0 %v3528_v51 }
  0xdb   :  { %1255 = vmatpush1.bf16.msra.mxu0 %v3526_v52 }
  0xdc   :  { %1256 = vmatprep.subr.bf16.mxu0 %v3534_v53  ;;  %v3606_v53 = vmov 2  }
  0xdd   :  { %3303 = vset.pattern.permute.xlu1 %v3606_v53 }
  0xdf   :  { %1257 = vmatpush1.bf16.msra.mxu0 %v3532_v60  ;;  %v2797_v60 = vld [vmem:[%s4941_s3 + $0x190] sm:$0xff] }
  0xe0   :  { %1258 = vmatprep.subr.bf16.mxu0 %v3540_v63  ;;  %v3137_v63 = vpack.c.bf16 %v2798_v61, %v2797_v60  ;;  %v2791_v60 = vld [vmem:[%s4941_s3 + $0x160] sm:$0xff]  ;;  %v2792_v61 = vld [vmem:[%s4941_s3 + $0x168] sm:$0xff] }
  0xe3   :  { %1259 = vmatpush1.bf16.msra.mxu0 %v3538_v1  ;;  %v2782_v1 = vld [vmem:[%s4941_s3 + $0x118] sm:$0xff] }
  0xe4   :  { %1260 = vmatprep.subr.bf16.mxu0 %v3546_v2  ;;  %v2799_v2 = vld [vmem:[%s4941_s3 + $0x1a0] sm:$0xff] }
  0xe7   :  { %1261 = vmatpush1.bf16.msra.mxu0 %v3544_v3  ;;  %v2800_v3 = vld [vmem:[%s4941_s3 + $0x1a8] sm:$0xff] }
  0xe8   :  { %1262 = vmatprep.subr.bf16.mxu0 %v3552_v4  ;;  %v3139_v4 = vpack.c.bf16 %v2782_v1, %v2781_v0  ;;  %v2810_v0 = vld [vmem:[%s4941_s3 + $0x1f8] sm:$0xff]  ;;  %v3609_v1 = vmov 3  }
  0xeb   :  { %1263 = vmatpush1.bf16.msra.mxu0 %v3550_v5  ;;  %v3141_v5 = vpack.c.bf16 %v2800_v3, %v2799_v2  ;;  %v2793_v3 = vld [vmem:[%s4941_s3 + $0x170] sm:$0xff] }
  0xec   :  { %1264 = vmatprep.subr.bf16.mxu0 %v3558_v6  ;;  %v2783_v6 = vld [vmem:[%s4941_s3 + $0x120] sm:$0xff] }
  0xef   :  { %1265 = vmatpush1.bf16.msra.mxu0 %v3556_v7  ;;  %v2784_v7 = vld [vmem:[%s4941_s3 + $0x128] sm:$0xff] }
  0xf0   :  { %1266 = vmatprep.subr.bf16.mxu0 %v3564_v8  ;;  %v2801_v8 = vld [vmem:[%s4941_s3 + $0x1b0] sm:$0xff] }
  0xf3   :  { %1267 = vmatpush1.bf16.msra.mxu0 %v3562_v9  ;;  %v2802_v9 = vld [vmem:[%s4941_s3 + $0x1b8] sm:$0xff] }
  0xf4   :  { %1268 = vmatprep.subr.bf16.mxu0 %v3570_v10  ;;  %v3143_v10 = vpack.c.bf16 %v2784_v7, %v2783_v6  ;;  %v4416_v6 = vsub.s32 4, %v4276_v31  ;;  %v1407_v7 = vld [vmem:[%s4943_s4] sm:$0xff] }
  0xf7   :  { %1269 = vmatpush1.bf16.msra.mxu0 %v3568_v11  ;;  %v3145_v11 = vpack.c.bf16 %v2802_v9, %v2801_v8  ;;  %v1422_v8 = vrot.slane %v1407_v7, %v4279_v32  ;;  %v1426_v9 = vrot.slane %v1407_v7, %v4416_v6 }
  0xf8   :  { %1270 = vmatprep.subr.bf16.mxu0 %v3576_v12  ;;  %v2785_v12 = vld [vmem:[%s4941_s3 + $0x130] sm:$0xff] }
  0xfb   :  { %1271 = vmatpush1.bf16.msra.mxu0 %v3574_v13  ;;  %v2786_v13 = vld [vmem:[%s4941_s3 + $0x138] sm:$0xff] }
  0xfc   :  { %1272 = vmatprep.subr.bf16.mxu0 %v3582_v14  ;;  %v2803_v14 = vld [vmem:[%s4941_s3 + $0x1c0] sm:$0xff] }
  0xff   :  { %1273 = vmatpush1.bf16.msra.mxu0 %v3580_v15  ;;  %v2804_v15 = vld [vmem:[%s4941_s3 + $0x1c8] sm:$0xff] }
 0x100   :  { %v3149_v17 = vpack.c.bf16 %v2804_v15, %v2803_v14  ;;  %v1436_v14 = vrot.slane %v1426_v9, %v4279_v32  ;;  %v1456_v15 = vrot.slane %v1407_v7, %v4285_v34 }
 0x102   :  { %1275 = vmatmul.mubr.bf16.vlgmr.msra.gmra.mrb[0].mxu0 %v3583_v16  ;;  %v3147_v16 = vpack.c.bf16 %v2786_v13, %v2785_v12  ;;  %v4430_v12 = vsub.s32 6, %v4276_v31  ;;  %v1432_v13 = vrot.slane %v1422_v8, %v4279_v32 }
 0x122   :  { %v1104_v25 = vpop.f32.mrb[0].mxu1 }
 0x123   :  { %v1106_v27 = vpop.f32.mrb[1].mxu1  ;;  %v1105_v37 = vadd.f32 %v1104_v25, %v213_v35 }
 0x124   :  { %v1108_v28 = vpop.f32.mrb[2].mxu1  ;;  %v1107_v38 = vadd.f32 %v1106_v27, %v217_v36 }
 0x125   :  { %v1110_v29 = vpop.f32.mrb[3].mxu1  ;;  %v1109_v40 = vadd.f32 %v1108_v28, %v213_v35 }
 0x126   :  { %v1111_v43 = vadd.f32 %v1110_v29, %v217_v36  ;;  %v2787_v29 = vld [vmem:[%s4941_s3 + $0x140] sm:$0xff] }
 0x127   :  { %v3151_v35 = vpack.c.bf16 %v2788_v30, %v2787_v29 }
 0x1d5   :  { %v1276_v39 = vpop.f32.mrb[0].mxu0 }
 0x1d6   :  { %v4289_v41 = vadd.f32 %v1276_v39, %v1105_v37  ;;  %v1278_v42 = vpop.f32.mrb[1].mxu0  ;;  %v2805_v39 = vld [vmem:[%s4941_s3 + $0x1d0] sm:$0xff] }
 0x1d7   :  { %v4291_v44 = vadd.f32 %v1278_v42, %v1107_v38  ;;  %v1280_v45 = vpop.f32.mrb[2].mxu0 }
 0x1d8   :  { %v4293_v46 = vadd.f32 %v1280_v45, %v1109_v40  ;;  %v1282_v47 = vpop.f32.mrb[3].mxu0  ;;  %v1285_v50 = vmax.f32 %v4289_v41, 0.0  ;;  %v2806_v40 = vld [vmem:[%s4941_s3 + $0x1d8] sm:$0xff] }
 0x1d9   :  { %v1286_v48 = vmax.f32 %v4291_v44, 0.0  ;;  %v4296_v49 = vadd.f32 %v1282_v47, %v1111_v43  ;;  %v3153_v42 = vpack.c.bf16 %v2806_v40, %v2805_v39  ;;  %v2789_v43 = vld [vmem:[%s4941_s3 + $0x150] sm:$0xff]  ;;  %v2790_v45 = vld [vmem:[%s4941_s3 + $0x158] sm:$0xff] }
 0x1da   :  { %v1287_v52 = vmax.f32 %v4293_v46, 0.0  ;;  %v3155_v55 = vpack.c.bf16 %v2790_v45, %v2789_v43  ;;  %v2828_v46 = vld [vmem:[%s4941_s3 + $0x280] sm:$0xff] }
 0x1db   :  { %v1288_v51 = vmax.f32 %v4296_v49, 0.0  ;;  %1385 = vmatprep.mubr.f32.mxu1 %v1286_v48  ;;  %v2829_v49 = vld [vmem:[%s4941_s3 + $0x288] sm:$0xff] }
 0x1dc   :  { %1386 = vmatmul.mubr.f32.vlgmr.msra.gmra.mrb[4].mxu1 %v1285_v50 }
 0x1dd   :  { %1390 = vmatprep.mubr.f32.mxu1 %v1288_v51  ;;  %3136 = vmatpush3.bf16.msra.mxu1 %v3135_v62  ;;  %v3159_v62 = vpack.c.bf16 %v2792_v61, %v2791_v60 }
 0x1de   :  { %3138 = vmatprep.subr.bf16.mxu1 %v3137_v63  ;;  %v2809_v63 = vld [vmem:[%s4941_s3 + $0x1f0] sm:$0xff] }
 0x1df   :  { %v3161_v2 = vpack.c.bf16 %v2810_v0, %v2809_v63 }
 0x1e0   :  { %1391 = vmatmul.mubr.f32.gmra.mrb[6].mxu1 %v1287_v52 }
 0x1e1   :  { %3140 = vmatpush3.bf16.msra.mxu1 %v3139_v4  ;;  %v2794_v4 = vld [vmem:[%s4941_s3 + $0x178] sm:$0xff] }
 0x1e2   :  { %3142 = vmatprep.subr.bf16.mxu1 %v3141_v5  ;;  %v3163_v5 = vpack.c.bf16 %v2794_v4, %v2793_v3 }
 0x1e5   :  { %3144 = vmatpush3.bf16.msra.mxu1 %v3143_v10  ;;  %v4424_v10 = vsub.s32 5, %v4276_v31 }
 0x1e6   :  { %3146 = vmatprep.subr.bf16.mxu1 %v3145_v11  ;;  %v4427_v11 = vsub.s32 2, %v4276_v31 }
 0x1e9   :  { %3148 = vmatpush3.bf16.msra.mxu1 %v3147_v16  ;;  %v1460_v16 = vrot.slane %v1407_v7, %v4424_v10 }
 0x1ea   :  { %3150 = vmatprep.subr.bf16.mxu1 %v3149_v17  ;;  %v4437_v17 = vsub.s32 3, %v4276_v31 }
 0x1ed   :  { %3152 = vmatpush3.bf16.msra.mxu1 %v3151_v35 }
 0x1ee   :  { %3154 = vmatprep.subr.bf16.mxu1 %v3153_v42 }
 0x1f1   :  { %3156 = vmatpush3.bf16.msra.mxu1 %v3155_v55 }
 0x1f2   :  { %3158 = vmatprep.subr.bf16.mxu1 %v3157_v59 }
 0x1f5   :  { %3160 = vmatpush3.bf16.msra.mxu1 %v3159_v62 }
 0x1f6   :  { %3162 = vmatprep.subr.bf16.mxu1 %v3161_v2 }
 0x1f9   :  { %3164 = vmatpush3.bf16.msra.mxu1 %v3163_v5 }
 0x2af   :  { %v2914_v18 = vpop.f32.mrb[4].mxu1 }
 0x2b0   :  { %v2915_v19 = vpop.f32.mrb[5].mxu1 }
 0x2b1   :  { %v2916_v20 = vadd.f32 %v2915_v19, %v2914_v18  ;;  %v4440_v18 = vsub.s32 7, %v4276_v31  ;;  %v1490_v19 = vrot.slane %v1407_v7, %v4427_v11 }
 0x2b3   :  { %v1399_v21 = vmul.f32 0.70710677, %v2916_v20  ;;  %v2917_v22 = vpop.f32.mrb[6].mxu1  ;;  %v1396_v27 = vmul.f32 0.5, %v2916_v20  ;;  %v1494_v20 = vrot.slane %v1407_v7, %v4430_v12  ;;  %v1500_v29 = vrot.slane %v1490_v19, %v4427_v11 }
 0x2b4   :  { %v2918_v23 = vpop.f32.mrb[7].mxu1 }
 0x2b5   :  { %3586 = verf.f32 %v1399_v21  ;;  %v2919_v24 = vadd.f32 %v2918_v23, %v2917_v22  ;;  %v1504_v31 = vrot.slane %v1494_v20, %v4427_v11 }
 0x2b7   :  { %v1400_v25 = vmul.f32 0.70710677, %v2919_v24  ;;  %v1397_v37 = vmul.f32 0.5, %v2919_v24 }
 0x2b9   :  { %3588 = verf.f32 %v1400_v25  ;;  %v1466_v25 = vrot.slane %v1456_v15, %v4285_v34 }
 0x2bf   :  { %v3587_v26 = vpop.eup %3586 }
 0x2c0   :  { %v1403_v28 = vadd.f32 1.0, %v3587_v26  ;;  %v1470_v26 = vrot.slane %v1460_v16, %v4285_v34 }
 0x2c2   :  { %v1405_v33 = vmul.f32 %v1403_v28, %v1396_v27  ;;  %v1524_v27 = vrot.slane %v1407_v7, %v4437_v17  ;;  %v1528_v28 = vrot.slane %v1407_v7, %v4440_v18 }
 0x2c3   :  { %v3589_v36 = vpop.eup %3588 }
 0x2c4   :  { %v1404_v38 = vadd.f32 1.0, %v3589_v36  ;;  %1480 = vperm.xlu1 %3303, %v1405_v33   ;;  %1410 = vperm.xlu0 %3301, %v1405_v33   ;;  %v1534_v39 = vrot.slane %v1524_v27, %v4437_v17  ;;  %v1538_v40 = vrot.slane %v1528_v28, %v4437_v17  ;;  %v2815_v27 = vld [vmem:[%s4941_s3 + $0x218] sm:$0xff]  ;;  %v2832_v28 = vld [vmem:[%s4941_s3 + $0x2a0] sm:$0xff] }
 0x2c6   :  { %v1406_v47 = vmul.f32 %v1404_v38, %v1397_v37 }
 0x2c8   :  { %3305 = vset.pattern.permute.xlu1 %v3607_v54  ;;  %3302 = vset.pattern.permute.xlu0 %v3608_v56 }
 0x2c9   :  { %1415 = vperm.xlu1 %3305, %v1406_v47   ;;  %1446 = vperm.xlu0 %3302, %v1405_v33  }
 0x2cd   :  { %3306 = vset.pattern.permute.xlu1 %v3608_v56  ;;  %3304 = vset.pattern.permute.xlu0 %v3609_v1 }
 0x2ce   :  { %1450 = vperm.xlu1 %3306, %v1406_v47   ;;  %1514 = vperm.xlu0 %3304, %v1405_v33  }
 0x2d2   :  { %3307 = vset.pattern.permute.xlu1 %v3606_v53  ;;  %3309 = vset.pattern.permute.xlu0 %v3607_v54 }
 0x2d3   :  { %1484 = vperm.xlu1 %3307, %v1406_v47  }
 0x2d7   :  { %3308 = vset.pattern.permute.xlu1 %v3609_v1 }
 0x2d8   :  { %1518 = vperm.xlu1 %3308, %v1406_v47  }
 0x2dc   :  { %3310 = vset.pattern.permute.xlu1 %v3608_v56 }
 0x343   :  { %v1481_v21 = vpop.permute.xlu1 %1480  ;;  %v1411_v22 = vpop.permute.xlu0 %1410 }
 0x344   :  { %v1437_v23 = vmul.f32 %v1432_v13, %v1411_v22  ;;  %v1438_v24 = vmul.f32 %v1436_v14, %v1411_v22  ;;  %v1505_v42 = vmul.f32 %v1500_v29, %v1481_v21  ;;  %v1506_v43 = vmul.f32 %v1504_v31, %v1481_v21  ;;  %v2813_v21 = vld [vmem:[%s4941_s3 + $0x208] sm:$0xff]  ;;  %v2830_v22 = vld [vmem:[%s4941_s3 + $0x290] sm:$0xff] }
 0x346   :  { %v1441_v35 = vadd.f32 %v1437_v23, %v1285_v50  ;;  %v1442_v36 = vadd.f32 %v1438_v24, %v1286_v48  ;;  %v2831_v23 = vld [vmem:[%s4941_s3 + $0x298] sm:$0xff] }
 0x348   :  { %v1416_v30 = vpop.permute.xlu1 %1415  ;;  %v1447_v33 = vpop.permute.xlu0 %1446 }
 0x349   :  { %v1471_v37 = vmul.f32 %v1466_v25, %v1447_v33  ;;  %v1472_v38 = vmul.f32 %v1470_v26, %v1447_v33  ;;  %v1439_v50 = vmul.f32 %v1432_v13, %v1416_v30  ;;  %v1440_v61 = vmul.f32 %v1436_v14, %v1416_v30  ;;  %v2816_v33 = vld [vmem:[%s4941_s3 + $0x220] sm:$0xff] }
 0x34b   :  { %v1475_v45 = vadd.f32 %v1471_v37, %v1441_v35  ;;  %v1476_v47 = vadd.f32 %v1472_v38, %v1442_v36  ;;  %v1443_v2 = vadd.f32 %v1439_v50, %v1287_v52  ;;  %v1444_v3 = vadd.f32 %v1440_v61, %v1288_v51  ;;  %v2812_v51 = vld [vmem:[%s4941_s3 + $0x200] sm:$0xff]  ;;  %v2817_v35 = vld [vmem:[%s4941_s3 + $0x228] sm:$0xff]  ;;  %v2834_v36 = vld [vmem:[%s4941_s3 + $0x2b0] sm:$0xff] }
 0x34c   :  { %v3165_v52 = vpack.c.bf16 %v2829_v49, %v2828_v46  ;;  %v3167_v24 = vpack.c.bf16 %v2813_v21, %v2812_v51  ;;  %v2835_v37 = vld [vmem:[%s4941_s3 + $0x2b8] sm:$0xff]  ;;  %v3175_v38 = vpack.c.bf16 %v2817_v35, %v2816_v33  ;;  %v2840_v46 = vld [vmem:[%s4941_s3 + $0x2e0] sm:$0xff]  ;;  %v2841_v49 = vld [vmem:[%s4941_s3 + $0x2e8] sm:$0xff] }
 0x34d   :  { %v1451_v55 = vpop.permute.xlu1 %1450  ;;  %v1509_v57 = vadd.f32 %v1505_v42, %v1475_v45  ;;  %v1510_v58 = vadd.f32 %v1506_v43, %v1476_v47  ;;  %v1515_v59 = vpop.permute.xlu0 %1514  ;;  %v2819_v42 = vld [vmem:[%s4941_s3 + $0x238] sm:$0xff]  ;;  %v2836_v43 = vld [vmem:[%s4941_s3 + $0x2c0] sm:$0xff]  ;;  %v2837_v45 = vld [vmem:[%s4941_s3 + $0x2c8] sm:$0xff]  ;;  %v3189_v51 = vpack.c.bf16 %v2841_v49, %v2840_v46 }
 0x34e   :  { %v1539_v60 = vmul.f32 %v1534_v39, %v1515_v59  ;;  %v1540_v41 = vmul.f32 %v1538_v40, %v1515_v59  ;;  %v1473_v62 = vmul.f32 %v1466_v25, %v1451_v55  ;;  %v1474_v63 = vmul.f32 %v1470_v26, %v1451_v55  ;;  %v2814_v26 = vld [vmem:[%s4941_s3 + $0x210] sm:$0xff]  ;;  %3166 = vmatprep.subr.bf16.mxu1 %v3165_v52  ;;  %v2824_v52 = vld [vmem:[%s4941_s3 + $0x260] sm:$0xff]  ;;  %v2825_v21 = vld [vmem:[%s4941_s3 + $0x268] sm:$0xff] }
 0x34f   :  { %v3169_v25 = vpack.c.bf16 %v2831_v23, %v2830_v22  ;;  %v3181_v55 = vpack.c.bf16 %v2837_v45, %v2836_v43  ;;  %v3191_v22 = vpack.c.bf16 %v2825_v21, %v2824_v52  ;;  %v2811_v35 = vld [vmem:[%s4943_s4 + $0x8] sm:$0xff] }
 0x350   :  { %v4456_v44 = vadd.f32 %v1539_v60, %v1509_v57  ;;  %v4458_v48 = vadd.f32 %v1540_v41, %v1510_v58  ;;  %v1477_v7 = vadd.f32 %v1473_v62, %v1443_v2  ;;  %v1478_v8 = vadd.f32 %v1474_v63, %v1444_v3  ;;  %v2820_v57 = vld [vmem:[%s4941_s3 + $0x240] sm:$0xff]  ;;  %v2821_v58 = vld [vmem:[%s4941_s3 + $0x248] sm:$0xff] }
 0x351   :  { %v3183_v59 = vpack.c.bf16 %v2821_v58, %v2820_v57  ;;  %v1749_v43 = vrot.slane %v2811_v35, %v4427_v11  ;;  %v1753_v45 = vrot.slane %v2811_v35, %v4430_v12 }
 0x352   :  { %v1485_v0 = vpop.permute.xlu1 %1484  ;;  %1644 = vmatprep.mubr.f32.mxu1 %v4458_v48 }
 0x353   :  { %1645 = vmatmul.mubr.f32.vlgmr.msra.gmra.mrb[8].mxu1 %v4456_v44  ;;  %v1507_v4 = vmul.f32 %v1500_v29, %v1485_v0  ;;  %v1508_v5 = vmul.f32 %v1504_v31, %v1485_v0  ;;  %v2833_v29 = vld [vmem:[%s4941_s3 + $0x2a8] sm:$0xff]  ;;  %v3171_v31 = vpack.c.bf16 %v2815_v27, %v2814_v26 }
 0x354   :  { %3168 = vmatpush3.bf16.msra.mxu1 %v3167_v24  ;;  %v3173_v30 = vpack.c.bf16 %v2833_v29, %v2832_v28  ;;  %v2842_v24 = vld [vmem:[%s4941_s3 + $0x2f0] sm:$0xff] }
 0x355   :  { %v1511_v13 = vadd.f32 %v1507_v4, %v1477_v7  ;;  %v1512_v14 = vadd.f32 %v1508_v5, %v1478_v8  ;;  %3170 = vmatprep.subr.bf16.mxu1 %v3169_v25  ;;  %v2838_v7 = vld [vmem:[%s4941_s3 + $0x2d0] sm:$0xff]  ;;  %v2839_v8 = vld [vmem:[%s4941_s3 + $0x2d8] sm:$0xff] }
 0x356   :  { %v2843_v25 = vld [vmem:[%s4941_s3 + $0x2f8] sm:$0xff]  ;;  %v2826_v29 = vld [vmem:[%s4941_s3 + $0x270] sm:$0xff] }
 0x357   :  { %v1519_v9 = vpop.permute.xlu1 %1518  ;;  %v3193_v28 = vpack.c.bf16 %v2843_v25, %v2842_v24 }
 0x358   :  { %v1541_v15 = vmul.f32 %v1534_v39, %v1519_v9  ;;  %v1542_v16 = vmul.f32 %v1538_v40, %v1519_v9  ;;  %3172 = vmatpush3.bf16.msra.mxu1 %v3171_v31  ;;  %v3177_v39 = vpack.c.bf16 %v2835_v37, %v2834_v36  ;;  %v2818_v40 = vld [vmem:[%s4941_s3 + $0x230] sm:$0xff]  ;;  %v2827_v31 = vld [vmem:[%s4941_s3 + $0x278] sm:$0xff]  ;;  %v1681_v36 = vrot.slane %v2811_v35, %v4279_v32 }
 0x359   :  { %3174 = vmatprep.subr.bf16.mxu1 %v3173_v30  ;;  %v3179_v47 = vpack.c.bf16 %v2819_v42, %v2818_v40  ;;  %v3195_v30 = vpack.c.bf16 %v2827_v31, %v2826_v29  ;;  %v1685_v37 = vrot.slane %v2811_v35, %v4416_v6 }
 0x35a   :  { %v4466_v19 = vadd.f32 %v1541_v15, %v1511_v13  ;;  %v4468_v20 = vadd.f32 %v1542_v16, %v1512_v14  ;;  %v3185_v13 = vpack.c.bf16 %v2839_v8, %v2838_v7  ;;  %v2822_v14 = vld [vmem:[%s4941_s3 + $0x250] sm:$0xff]  ;;  %v2823_v15 = vld [vmem:[%s4941_s3 + $0x258] sm:$0xff]  ;;  %v1691_v40 = vrot.slane %v1681_v36, %v4279_v32 }
 0x35b   :  { %v3187_v16 = vpack.c.bf16 %v2823_v15, %v2822_v14  ;;  %v1695_v42 = vrot.slane %v1685_v37, %v4279_v32 }
 0x35c   :  { %1649 = vmatprep.mubr.f32.mxu1 %v4468_v20  ;;  %3176 = vmatpush3.bf16.msra.mxu1 %v3175_v38  ;;  %v1715_v38 = vrot.slane %v2811_v35, %v4285_v34 }
 0x35d   :  { %1650 = vmatmul.mubr.f32.gmra.mrb[10].mxu1 %v4466_v19  ;;  %3178 = vmatprep.subr.bf16.mxu1 %v3177_v39  ;;  %v1719_v39 = vrot.slane %v2811_v35, %v4424_v10 }
 0x360   :  { %3180 = vmatpush3.bf16.msra.mxu1 %v3179_v47  ;;  %v1725_v47 = vrot.slane %v1715_v38, %v4285_v34 }
 0x361   :  { %3182 = vmatprep.subr.bf16.mxu1 %v3181_v55  ;;  %v1729_v55 = vrot.slane %v1719_v39, %v4285_v34 }
 0x364   :  { %3184 = vmatpush3.bf16.msra.mxu1 %v3183_v59  ;;  %v1783_v59 = vrot.slane %v2811_v35, %v4437_v17 }
 0x365   :  { %3186 = vmatprep.subr.bf16.mxu1 %v3185_v13 }
 0x368   :  { %3188 = vmatpush3.bf16.msra.mxu1 %v3187_v16 }
 0x369   :  { %3190 = vmatprep.subr.bf16.mxu1 %v3189_v51 }
 0x36c   :  { %3192 = vmatpush3.bf16.msra.mxu1 %v3191_v22 }
 0x36d   :  { %3194 = vmatprep.subr.bf16.mxu1 %v3193_v28 }
 0x370   :  { %3196 = vmatpush3.bf16.msra.mxu1 %v3195_v30 }
 0x426   :  { %v2952_v60 = vpop.f32.mrb[8].mxu1 }
 0x427   :  { %v2953_v41 = vpop.f32.mrb[9].mxu1 }
 0x428   :  { %v2954_v50 = vadd.f32 %v2953_v41, %v2952_v60  ;;  %v1787_v60 = vrot.slane %v2811_v35, %v4440_v18 }
 0x42a   :  { %v1657_v61 = vmul.f32 0.70710677, %v2954_v50  ;;  %v1655_v4 = vmul.f32 0.5, %v2954_v50 }
 0x42c   :  { %3590 = verf.f32 %v1657_v61  ;;  %v1759_v61 = vrot.slane %v1749_v43, %v4427_v11  ;;  %v2845_v43 = vld [vmem:[%s4941_s3 + $0x300] sm:$0xff] }
 0x430   :  { %v2955_v62 = vpop.f32.mrb[10].mxu1 }
 0x431   :  { %v2956_v63 = vpop.f32.mrb[11].mxu1 }
 0x432   :  { %v2957_v0 = vadd.f32 %v2956_v63, %v2955_v62  ;;  %v1763_v62 = vrot.slane %v1753_v45, %v4427_v11 }
 0x434   :  { %v1658_v2 = vmul.f32 0.70710677, %v2957_v0  ;;  %v1656_v26 = vmul.f32 0.5, %v2957_v0 }
 0x436   :  { %v3591_v3 = vpop.eup %3590  ;;  %3592 = verf.f32 %v1658_v2 }
 0x437   :  { %v1661_v5 = vadd.f32 1.0, %v3591_v3 }
 0x439   :  { %v1663_v9 = vmul.f32 %v1661_v5, %v1655_v4  ;;  %v1793_v4 = vrot.slane %v1783_v59, %v4437_v17  ;;  %v1797_v5 = vrot.slane %v1787_v60, %v4437_v17  ;;  %v2847_v60 = vld [vmem:[%s4941_s3 + $0x310] sm:$0xff] }
 0x43b   :  { %1705 = vperm.xlu1 %3310, %v1663_v9   ;;  %1669 = vperm.xlu0 %3309, %v1663_v9  }
 0x43f   :  { %3312 = vset.pattern.permute.xlu1 %v3609_v1  ;;  %3311 = vset.pattern.permute.xlu0 %v3606_v53 }
 0x440   :  { %v3593_v23 = vpop.eup %3592  ;;  %1773 = vperm.xlu1 %3312, %v1663_v9   ;;  %1739 = vperm.xlu0 %3311, %v1663_v9  }
 0x441   :  { %v1662_v27 = vadd.f32 1.0, %v3593_v23 }
 0x443   :  { %v1664_v33 = vmul.f32 %v1662_v27, %v1656_v26 }
 0x444   :  { %3313 = vset.pattern.permute.xlu1 %v3607_v54 }
 0x445   :  { %1674 = vperm.xlu1 %3313, %v1664_v33   ;;  %1743 = vperm.xlu0 %3311, %v1664_v33  }
 0x449   :  { %3314 = vset.pattern.permute.xlu1 %v3608_v56  ;;  %3316 = vset.pattern.permute.xlu0 %v3607_v54 }
 0x44a   :  { %1709 = vperm.xlu1 %3314, %v1664_v33  }
 0x44e   :  { %3315 = vset.pattern.permute.xlu1 %v3609_v1 }
 0x44f   :  { %1777 = vperm.xlu1 %3315, %v1664_v33  }
 0x453   :  { %3317 = vset.pattern.permute.xlu1 %v3608_v56 }
 0x4ba   :  { %v1706_v57 = vpop.permute.xlu1 %1705  ;;  %v1670_v58 = vpop.permute.xlu0 %1669 }
 0x4bb   :  { %v1696_v41 = vmul.f32 %v1691_v40, %v1670_v58  ;;  %v1697_v50 = vmul.f32 %v1695_v42, %v1670_v58  ;;  %v1730_v63 = vmul.f32 %v1725_v47, %v1706_v57  ;;  %v1731_v0 = vmul.f32 %v1729_v55, %v1706_v57  ;;  %v2864_v57 = vld [vmem:[%s4941_s3 + $0x398] sm:$0xff] }
 0x4bd   :  { %v1700_v2 = vadd.f32 %v1696_v41, %v4456_v44  ;;  %v1701_v3 = vadd.f32 %v1697_v50, %v4458_v48  ;;  %v2848_v41 = vld [vmem:[%s4941_s3 + $0x318] sm:$0xff]  ;;  %v2865_v50 = vld [vmem:[%s4941_s3 + $0x3a0] sm:$0xff] }
 0x4bf   :  { %v1774_v7 = vpop.permute.xlu1 %1773  ;;  %v1734_v8 = vadd.f32 %v1730_v63, %v1700_v2  ;;  %v1735_v9 = vadd.f32 %v1731_v0, %v1701_v3  ;;  %v1740_v13 = vpop.permute.xlu0 %1739  ;;  %v2849_v0 = vld [vmem:[%s4941_s3 + $0x320] sm:$0xff]  ;;  %v2850_v2 = vld [vmem:[%s4941_s3 + $0x328] sm:$0xff]  ;;  %v2867_v3 = vld [vmem:[%s4941_s3 + $0x3b0] sm:$0xff] }
 0x4c0   :  { %v1764_v14 = vmul.f32 %v1759_v61, %v1740_v13  ;;  %v1765_v15 = vmul.f32 %v1763_v62, %v1740_v13  ;;  %v1798_v16 = vmul.f32 %v1793_v4, %v1774_v7  ;;  %v1799_v46 = vmul.f32 %v1797_v5, %v1774_v7  ;;  %v2869_v13 = vld [vmem:[%s4941_s3 + $0x3c0] sm:$0xff] }
 0x4c2   :  { %v1768_v49 = vadd.f32 %v1764_v14, %v1734_v8  ;;  %v1769_v51 = vadd.f32 %v1765_v15, %v1735_v9  ;;  %v2851_v8 = vld [vmem:[%s4941_s3 + $0x330] sm:$0xff]  ;;  %v2852_v9 = vld [vmem:[%s4941_s3 + $0x338] sm:$0xff]  ;;  %v2870_v14 = vld [vmem:[%s4941_s3 + $0x3c8] sm:$0xff] }
 0x4c3   :  { %v3211_v15 = vpack.c.bf16 %v2852_v9, %v2851_v8 }
 0x4c4   :  { %v4596_v52 = vadd.f32 %v1798_v16, %v1768_v49  ;;  %v1675_v21 = vpop.permute.xlu1 %1674  ;;  %v4598_v44 = vadd.f32 %v1799_v46, %v1769_v51  ;;  %v1744_v23 = vpop.permute.xlu0 %1743  ;;  %v3213_v16 = vpack.c.bf16 %v2870_v14, %v2869_v13  ;;  %v2853_v46 = vld [vmem:[%s4941_s3 + $0x340] sm:$0xff]  ;;  %v2854_v49 = vld [vmem:[%s4941_s3 + $0x348] sm:$0xff] }
 0x4c5   :  { %v1698_v48 = vmul.f32 %v1691_v40, %v1675_v21  ;;  %v1699_v22 = vmul.f32 %v1695_v42, %v1675_v21  ;;  %v1766_v29 = vmul.f32 %v1759_v61, %v1744_v23  ;;  %v1767_v31 = vmul.f32 %v1763_v62, %v1744_v23  ;;  %v2866_v61 = vld [vmem:[%s4941_s3 + $0x3a8] sm:$0xff] }
 0x4c6   :  { %1903 = vmatprep.mubr.f32.mxu1 %v4598_v44  ;;  %v3203_v62 = vpack.c.bf16 %v2848_v41, %v2847_v60  ;;  %v3205_v63 = vpack.c.bf16 %v2866_v61, %v2865_v50  ;;  %v3215_v51 = vpack.c.bf16 %v2854_v49, %v2853_v46  ;;  %v2859_v60 = vld [vmem:[%s4941_s3 + $0x370] sm:$0xff]  ;;  %v2860_v41 = vld [vmem:[%s4941_s3 + $0x378] sm:$0xff] }
 0x4c7   :  { %1904 = vmatmul.mubr.f32.vlgmr.msra.gmra.mrb[12].mxu1 %v4596_v52  ;;  %v1702_v25 = vadd.f32 %v1698_v48, %v4466_v19  ;;  %v1703_v26 = vadd.f32 %v1699_v22, %v4468_v20  ;;  %v2861_v19 = vld [vmem:[%s4941_s3 + $0x380] sm:$0xff]  ;;  %v2862_v20 = vld [vmem:[%s4941_s3 + $0x388] sm:$0xff]  ;;  %v3227_v50 = vpack.c.bf16 %v2860_v41, %v2859_v60 }
 0x4c8   :  { %v3197_v45 = vpack.c.bf16 %v2862_v20, %v2861_v19  ;;  %v2873_v19 = vld [vmem:[%s4941_s3 + $0x3e0] sm:$0xff]  ;;  %v2874_v20 = vld [vmem:[%s4941_s3 + $0x3e8] sm:$0xff] }
 0x4c9   :  { %v1710_v24 = vpop.permute.xlu1 %1709 }
 0x4ca   :  { %v1732_v27 = vmul.f32 %v1725_v47, %v1710_v24  ;;  %v1733_v28 = vmul.f32 %v1729_v55, %v1710_v24  ;;  %v2846_v47 = vld [vmem:[%s4941_s3 + $0x308] sm:$0xff]  ;;  %v2863_v55 = vld [vmem:[%s4941_s3 + $0x390] sm:$0xff]  ;;  %3198 = vmatprep.subr.bf16.mxu1 %v3197_v45  ;;  %v2857_v45 = vld [vmem:[%s4941_s3 + $0x360] sm:$0xff] }
 0x4cb   :  { %v3199_v58 = vpack.c.bf16 %v2846_v47, %v2845_v43  ;;  %v3201_v59 = vpack.c.bf16 %v2864_v57, %v2863_v55  ;;  %v3221_v43 = vpack.c.bf16 %v2874_v20, %v2873_v19  ;;  %v2858_v47 = vld [vmem:[%s4941_s3 + $0x368] sm:$0xff]  ;;  %v2875_v57 = vld [vmem:[%s4941_s3 + $0x3f0] sm:$0xff] }
 0x4cc   :  { %v1736_v30 = vadd.f32 %v1732_v27, %v1702_v25  ;;  %v1737_v33 = vadd.f32 %v1733_v28, %v1703_v26  ;;  %v3223_v55 = vpack.c.bf16 %v2858_v47, %v2857_v45 }
 0x4cd   :  { %3200 = vmatpush3.bf16.msra.mxu1 %v3199_v58  ;;  %v2876_v58 = vld [vmem:[%s4941_s3 + $0x3f8] sm:$0xff] }
 0x4ce   :  { %v1778_v35 = vpop.permute.xlu1 %1777  ;;  %v1770_v36 = vadd.f32 %v1766_v29, %v1736_v30  ;;  %v1771_v37 = vadd.f32 %v1767_v31, %v1737_v33  ;;  %3202 = vmatprep.subr.bf16.mxu1 %v3201_v59  ;;  %v2871_v30 = vld [vmem:[%s4941_s3 + $0x3d0] sm:$0xff]  ;;  %v2872_v33 = vld [vmem:[%s4941_s3 + $0x3d8] sm:$0xff]  ;;  %v3225_v59 = vpack.c.bf16 %v2876_v58, %v2875_v57 }
 0x4cf   :  { %v1800_v38 = vmul.f32 %v1793_v4, %v1778_v35  ;;  %v1801_v39 = vmul.f32 %v1797_v5, %v1778_v35  ;;  %v2868_v4 = vld [vmem:[%s4941_s3 + $0x3b8] sm:$0xff]  ;;  %v3207_v5 = vpack.c.bf16 %v2850_v2, %v2849_v0  ;;  %v2844_v2 = vld [vmem:[%s4943_s4 + $0x10] sm:$0xff] }
 0x4d0   :  { %v3209_v7 = vpack.c.bf16 %v2868_v4, %v2867_v3  ;;  %v1940_v3 = vrot.slane %v2844_v2, %v4279_v32  ;;  %v1944_v4 = vrot.slane %v2844_v2, %v4416_v6  ;;  %v2008_v13 = vrot.slane %v2844_v2, %v4427_v11 }
 0x4d1   :  { %v4604_v40 = vadd.f32 %v1800_v38, %v1770_v36  ;;  %v4606_v42 = vadd.f32 %v1801_v39, %v1771_v37  ;;  %3204 = vmatpush3.bf16.msra.mxu1 %v3203_v62  ;;  %v3217_v36 = vpack.c.bf16 %v2872_v33, %v2871_v30  ;;  %v2855_v37 = vld [vmem:[%s4941_s3 + $0x350] sm:$0xff]  ;;  %v2856_v38 = vld [vmem:[%s4941_s3 + $0x358] sm:$0xff]  ;;  %v2012_v14 = vrot.slane %v2844_v2, %v4430_v12 }
 0x4d2   :  { %3206 = vmatprep.subr.bf16.mxu1 %v3205_v63  ;;  %v3219_v39 = vpack.c.bf16 %v2856_v38, %v2855_v37  ;;  %v1950_v8 = vrot.slane %v1940_v3, %v4279_v32  ;;  %v1954_v9 = vrot.slane %v1944_v4, %v4279_v32 }
 0x4d3   :  { %1908 = vmatprep.mubr.f32.mxu1 %v4606_v42 }
 0x4d4   :  { %1909 = vmatmul.mubr.f32.gmra.mrb[14].mxu1 %v4604_v40 }
 0x4d5   :  { %3208 = vmatpush3.bf16.msra.mxu1 %v3207_v5  ;;  %v1974_v5 = vrot.slane %v2844_v2, %v4285_v34 }
 0x4d6   :  { %3210 = vmatprep.subr.bf16.mxu1 %v3209_v7  ;;  %v1978_v7 = vrot.slane %v2844_v2, %v4424_v10 }
 0x4d9   :  { %3212 = vmatpush3.bf16.msra.mxu1 %v3211_v15  ;;  %v1984_v15 = vrot.slane %v1974_v5, %v4285_v34 }
 0x4da   :  { %3214 = vmatprep.subr.bf16.mxu1 %v3213_v16  ;;  %v1988_v16 = vrot.slane %v1978_v7, %v4285_v34 }
 0x4dd   :  { %3216 = vmatpush3.bf16.msra.mxu1 %v3215_v51  ;;  %v2042_v51 = vrot.slane %v2844_v2, %v4437_v17 }
 0x4de   :  { %3218 = vmatprep.subr.bf16.mxu1 %v3217_v36 }
 0x4e1   :  { %3220 = vmatpush3.bf16.msra.mxu1 %v3219_v39 }
 0x4e2   :  { %3222 = vmatprep.subr.bf16.mxu1 %v3221_v43 }
 0x4e5   :  { %3224 = vmatpush3.bf16.msra.mxu1 %v3223_v55 }
 0x4e6   :  { %3226 = vmatprep.subr.bf16.mxu1 %v3225_v59 }
 0x4e9   :  { %3228 = vmatpush3.bf16.msra.mxu1 %v3227_v50 }
 0x59a   :  { %v2990_v21 = vpop.f32.mrb[12].mxu1 }
 0x59b   :  { %v2991_v48 = vpop.f32.mrb[13].mxu1 }
 0x59c   :  { %v2992_v22 = vadd.f32 %v2991_v48, %v2990_v21  ;;  %v2046_v21 = vrot.slane %v2844_v2, %v4440_v18 }
 0x59e   :  { %v1916_v23 = vmul.f32 0.70710677, %v2992_v22  ;;  %v1914_v28 = vmul.f32 0.5, %v2992_v22 }
 0x5a0   :  { %3594 = verf.f32 %v1916_v23  ;;  %v2018_v23 = vrot.slane %v2008_v13, %v4427_v11 }
 0x5a7   :  { %v2993_v24 = vpop.f32.mrb[14].mxu1 }
 0x5a8   :  { %v2994_v25 = vpop.f32.mrb[15].mxu1 }
 0x5a9   :  { %v2995_v26 = vadd.f32 %v2994_v25, %v2993_v24  ;;  %v2022_v24 = vrot.slane %v2012_v14, %v4427_v11 }
 0x5aa   :  { %v3595_v27 = vpop.eup %3594 }
 0x5ab   :  { %v1920_v29 = vadd.f32 1.0, %v3595_v27  ;;  %v1917_v31 = vmul.f32 0.70710677, %v2995_v26  ;;  %v1915_v62 = vmul.f32 0.5, %v2995_v26 }
 0x5ad   :  { %v1922_v35 = vmul.f32 %v1920_v29, %v1914_v28  ;;  %3596 = verf.f32 %v1917_v31  ;;  %v2052_v29 = vrot.slane %v2042_v51, %v4437_v17  ;;  %v2056_v31 = vrot.slane %v2046_v21, %v4437_v17 }
 0x5af   :  { %1964 = vperm.xlu1 %3317, %v1922_v35   ;;  %1928 = vperm.xlu0 %3316, %v1922_v35  }
 0x5b3   :  { %3319 = vset.pattern.permute.xlu1 %v3609_v1  ;;  %3318 = vset.pattern.permute.xlu0 %v3606_v53 }
 0x5b4   :  { %2032 = vperm.xlu1 %3319, %v1922_v35   ;;  %1998 = vperm.xlu0 %3318, %v1922_v35  }
 0x5b7   :  { %v3597_v61 = vpop.eup %3596 }
 0x5b8   :  { %v1921_v63 = vadd.f32 1.0, %v3597_v61  ;;  %3320 = vset.pattern.permute.xlu1 %v3607_v54 }
 0x5ba   :  { %v1923_v0 = vmul.f32 %v1921_v63, %v1915_v62 }
 0x5bc   :  { %2002 = vperm.xlu0 %3318, %v1923_v0   ;;  %1933 = vperm.xlu1 %3320, %v1923_v0  }
 0x5c0   :  { %3321 = vset.pattern.permute.xlu1 %v3608_v56  ;;  %3323 = vset.pattern.permute.xlu0 %v3607_v54 }
 0x5c1   :  { %1968 = vperm.xlu1 %3321, %v1923_v0  }
 0x5c5   :  { %3322 = vset.pattern.permute.xlu1 %v3609_v1 }
 0x5c6   :  { %2036 = vperm.xlu1 %3322, %v1923_v0  }
 0x5ca   :  { %3324 = vset.pattern.permute.xlu1 %v3608_v56 }
 0x62e   :  { %v1965_v46 = vpop.permute.xlu1 %1964  ;;  %v1929_v49 = vpop.permute.xlu0 %1928 }
 0x62f   :  { %v1955_v48 = vmul.f32 %v1950_v8, %v1929_v49  ;;  %v1956_v22 = vmul.f32 %v1954_v9, %v1929_v49  ;;  %v1989_v25 = vmul.f32 %v1984_v15, %v1965_v46  ;;  %v1990_v26 = vmul.f32 %v1988_v16, %v1965_v46 }
 0x631   :  { %v1959_v27 = vadd.f32 %v1955_v48, %v4596_v52  ;;  %v1960_v28 = vadd.f32 %v1956_v22, %v4598_v44 }
 0x633   :  { %v2033_v30 = vpop.permute.xlu1 %2032  ;;  %v1993_v33 = vadd.f32 %v1989_v25, %v1959_v27  ;;  %v1994_v35 = vadd.f32 %v1990_v26, %v1960_v28  ;;  %v1999_v36 = vpop.permute.xlu0 %1998 }
 0x634   :  { %v2023_v37 = vmul.f32 %v2018_v23, %v1999_v36  ;;  %v2024_v38 = vmul.f32 %v2022_v24, %v1999_v36  ;;  %v2057_v39 = vmul.f32 %v2052_v29, %v2033_v30  ;;  %v2058_v19 = vmul.f32 %v2056_v31, %v2033_v30 }
 0x636   :  { %v2027_v20 = vadd.f32 %v2023_v37, %v1993_v33  ;;  %v2028_v43 = vadd.f32 %v2024_v38, %v1994_v35 }
 0x638   :  { %v4734_v45 = vadd.f32 %v2057_v39, %v2027_v20  ;;  %v4736_v47 = vadd.f32 %v2058_v19, %v2028_v43 }
 0x63a   :  { %2162 = vmatprep.mubr.f32.mxu1 %v4736_v47 }
 0x63b   :  { %v1934_v52 = vpop.permute.xlu1 %1933  ;;  %2163 = vmatmul.mubr.f32.vlgmr.msra.gmra.mrb[16].mxu1 %v4734_v45  ;;  %v2003_v57 = vpop.permute.xlu0 %2002 }
 0x63c   :  { %v1957_v44 = vmul.f32 %v1950_v8, %v1934_v52  ;;  %v1958_v55 = vmul.f32 %v1954_v9, %v1934_v52  ;;  %v2025_v61 = vmul.f32 %v2018_v23, %v2003_v57  ;;  %v2026_v62 = vmul.f32 %v2022_v24, %v2003_v57 }
 0x63e   :  { %v1961_v59 = vadd.f32 %v1957_v44, %v4604_v40  ;;  %v1962_v60 = vadd.f32 %v1958_v55, %v4606_v42 }
 0x640   :  { %v1969_v58 = vpop.permute.xlu1 %1968 }
 0x641   :  { %v1991_v41 = vmul.f32 %v1984_v15, %v1969_v58  ;;  %v1992_v50 = vmul.f32 %v1988_v16, %v1969_v58 }
 0x643   :  { %v1995_v63 = vadd.f32 %v1991_v41, %v1961_v59  ;;  %v1996_v0 = vadd.f32 %v1992_v50, %v1962_v60 }
 0x645   :  { %v2037_v2 = vpop.permute.xlu1 %2036  ;;  %v2029_v3 = vadd.f32 %v2025_v61, %v1995_v63  ;;  %v2030_v4 = vadd.f32 %v2026_v62, %v1996_v0 }
 0x646   :  { %v2059_v5 = vmul.f32 %v2052_v29, %v2037_v2  ;;  %v2060_v7 = vmul.f32 %v2056_v31, %v2037_v2 }
 0x648   :  { %v4742_v13 = vadd.f32 %v2059_v5, %v2029_v3  ;;  %v4744_v8 = vadd.f32 %v2060_v7, %v2030_v4 }
 0x64a   :  { %2167 = vmatprep.mubr.f32.mxu1 %v4744_v8 }
 0x64b   :  { %2168 = vmatmul.mubr.f32.gmra.mrb[18].mxu1 %v4742_v13 }
 0x70e   :  { %v3028_v40 = vpop.f32.mrb[16].mxu1 }
 0x70f   :  { %v3029_v42 = vpop.f32.mrb[17].mxu1 }
 0x710   :  { %v3030_v9 = vadd.f32 %v3029_v42, %v3028_v40 }
 0x712   :  { %v2175_v14 = vmul.f32 0.70710677, %v3030_v9  ;;  %v2173_v46 = vmul.f32 0.5, %v3030_v9 }
 0x714   :  { %3598 = verf.f32 %v2175_v14 }
 0x71e   :  { %v3599_v15 = vpop.eup %3598  ;;  %v3031_v16 = vpop.f32.mrb[18].mxu1 }
 0x71f   :  { %v2179_v49 = vadd.f32 1.0, %v3599_v15  ;;  %v3032_v51 = vpop.f32.mrb[19].mxu1 }
 0x720   :  { %v3033_v21 = vadd.f32 %v3032_v51, %v3031_v16 }
 0x721   :  { %v2181_v48 = vmul.f32 %v2179_v49, %v2173_v46 }
 0x722   :  { %v2176_v22 = vmul.f32 0.70710677, %v3033_v21  ;;  %v2174_v24 = vmul.f32 0.5, %v3033_v21 }
 0x723   :  { %2223 = vperm.xlu1 %3324, %v2181_v48   ;;  %2187 = vperm.xlu0 %3323, %v2181_v48  }
 0x724   :  { %3600 = verf.f32 %v2176_v22 }
 0x727   :  { %3326 = vset.pattern.permute.xlu1 %v3609_v1  ;;  %3325 = vset.pattern.permute.xlu0 %v3606_v53  ;;  %v2877_v53 = vld [vmem:[%s4943_s4 + $0x18] sm:$0xff] }
 0x728   :  { %2291 = vperm.xlu1 %3326, %v2181_v48   ;;  %2257 = vperm.xlu0 %3325, %v2181_v48   ;;  %v2203_v27 = vrot.slane %v2877_v53, %v4416_v6  ;;  %v2233_v28 = vrot.slane %v2877_v53, %v4285_v34  ;;  %v2237_v29 = vrot.slane %v2877_v53, %v4424_v10 }
 0x729   :  { %v2267_v30 = vrot.slane %v2877_v53, %v4427_v11  ;;  %v2301_v6 = vrot.slane %v2877_v53, %v4437_v17  ;;  %v2305_v38 = vrot.slane %v2877_v53, %v4440_v18 }
 0x72a   :  { %v2213_v31 = vrot.slane %v2203_v27, %v4279_v32  ;;  %v2243_v33 = vrot.slane %v2233_v28, %v4285_v34  ;;  %v2247_v35 = vrot.slane %v2237_v29, %v4285_v34  ;;  %v2407_v27 = vld [vmem:[%s4944_s7 + $0x90] sm:$0xff]  ;;  %v2408_v28 = vld [vmem:[%s4944_s7 + $0x98] sm:$0xff] }
 0x72b   :  { %v2277_v19 = vrot.slane %v2267_v30, %v4427_v11  ;;  %v2311_v55 = vrot.slane %v2301_v6, %v4437_v17  ;;  %v2315_v57 = vrot.slane %v2305_v38, %v4437_v17  ;;  %v2392_v30 = vld [vmem:[%s4944_s7 + $0x18] sm:$0xff]  ;;  %v2394_v6 = vld [vmem:[%s4944_s7 + $0x28] sm:$0xff] }
 0x72c   :  { %3327 = vset.pattern.permute.xlu1 %v3607_v54  ;;  %v2199_v54 = vrot.slane %v2877_v53, %v4279_v32 }
 0x72e   :  { %v3601_v23 = vpop.eup %3600 }
 0x72f   :  { %v2180_v25 = vadd.f32 1.0, %v3601_v23 }
 0x731   :  { %v2182_v26 = vmul.f32 %v2180_v25, %v2174_v24 }
 0x733   :  { %2261 = vperm.xlu0 %3325, %v2182_v26   ;;  %2192 = vperm.xlu1 %3327, %v2182_v26  }
 0x737   :  { %3328 = vset.pattern.permute.xlu1 %v3608_v56  ;;  %3330 = vset.pattern.permute.xlu0 %v3609_v1  ;;  %v2209_v56 = vrot.slane %v2199_v54, %v4279_v32  ;;  %v2390_v54 = vld [vmem:[%s4944_s7 + $0x8] sm:$0xff] }
 0x738   :  { %2227 = vperm.xlu1 %3328, %v2182_v26  }
 0x73c   :  { %3329 = vset.pattern.permute.xlu1 %v3609_v1  ;;  %v2271_v1 = vrot.slane %v2877_v53, %v4430_v12 }
 0x73d   :  { %2295 = vperm.xlu1 %3329, %v2182_v26   ;;  %v2389_v26 = vld [vmem:[%s4944_s7] sm:$0xff] }
 0x73e   :  { %v2281_v20 = vrot.slane %v2271_v1, %v4427_v11  ;;  %v3231_v29 = vpack.c.bf16 %v2390_v54, %v2389_v26  ;;  %v2409_v1 = vld [vmem:[%s4944_s7 + $0xa0] sm:$0xff] }
 0x73f   :  { %v2373_v54 = vld [vmem:[%s4946_s6] sm:$0x3] }
 0x7a2   :  { %v2224_v36 = vpop.permute.xlu1 %2223  ;;  %v2188_v37 = vpop.permute.xlu0 %2187 }
 0x7a3   :  { %v2214_v39 = vmul.f32 %v2209_v56, %v2188_v37  ;;  %v2215_v10 = vmul.f32 %v2213_v31, %v2188_v37  ;;  %v2248_v43 = vmul.f32 %v2243_v33, %v2224_v36  ;;  %v2249_v52 = vmul.f32 %v2247_v35, %v2224_v36  ;;  %v2393_v37 = vld [vmem:[%s4944_s7 + $0x20] sm:$0xff] }
 0x7a4   :  { %v3239_v38 = vpack.c.bf16 %v2394_v6, %v2393_v37 }
 0x7a5   :  { %v2218_v12 = vadd.f32 %v2214_v39, %v4734_v45  ;;  %v2219_v44 = vadd.f32 %v2215_v10, %v4736_v47 }
 0x7a7   :  { %v2292_v58 = vpop.permute.xlu1 %2291  ;;  %v2252_v59 = vadd.f32 %v2248_v43, %v2218_v12  ;;  %v2253_v60 = vadd.f32 %v2249_v52, %v2219_v44  ;;  %v2258_v18 = vpop.permute.xlu0 %2257 }
 0x7a8   :  { %v2282_v41 = vmul.f32 %v2277_v19, %v2258_v18  ;;  %v2283_v50 = vmul.f32 %v2281_v20, %v2258_v18  ;;  %v2316_v61 = vmul.f32 %v2311_v55, %v2292_v58  ;;  %v2317_v62 = vmul.f32 %v2315_v57, %v2292_v58 }
 0x7aa   :  { %v2286_v63 = vadd.f32 %v2282_v41, %v2252_v59  ;;  %v2287_v11 = vadd.f32 %v2283_v50, %v2253_v60  ;;  %v2411_v59 = vld [vmem:[%s4944_s7 + $0xb0] sm:$0xff]  ;;  %v2412_v60 = vld [vmem:[%s4944_s7 + $0xb8] sm:$0xff] }
 0x7ab   :  { %v3241_v18 = vpack.c.bf16 %v2412_v60, %v2411_v59  ;;  %v2395_v41 = vld [vmem:[%s4944_s7 + $0x30] sm:$0xff]  ;;  %v2396_v50 = vld [vmem:[%s4944_s7 + $0x38] sm:$0xff]  ;;  %v2509_v60 = vld [vmem:[%s4947_s9 + $0x20] sm:$0xff] }
 0x7ac   :  { %v2320_v0 = vadd.f32 %v2316_v61, %v2286_v63  ;;  %v2321_v2 = vadd.f32 %v2317_v62, %v2287_v11  ;;  %v3243_v63 = vpack.c.bf16 %v2396_v50, %v2395_v41  ;;  %v2511_v50 = vld [vmem:[%s4947_s9 + $0x30] sm:$0xff] }
 0x7ae   :  { %v2324_v3 = vadd.f32 %v2321_v2, %v2320_v0 }
 0x7b0   :  { %2325 = vadd.xlane.f32.xlu0 %v2324_v3 }
 0x7b2   :  { %v2193_v45 = vpop.permute.xlu1 %2192  ;;  %v2262_v5 = vpop.permute.xlu0 %2261 }
 0x7b3   :  { %v2216_v47 = vmul.f32 %v2209_v56, %v2193_v45  ;;  %v2217_v4 = vmul.f32 %v2213_v31, %v2193_v45  ;;  %v2284_v14 = vmul.f32 %v2277_v19, %v2262_v5  ;;  %v2285_v15 = vmul.f32 %v2281_v20, %v2262_v5  ;;  %v2391_v31 = vld [vmem:[%s4944_s7 + $0x10] sm:$0xff]  ;;  %v2397_v45 = vld [vmem:[%s4944_s7 + $0x40] sm:$0xff] }
 0x7b4   :  { %v3233_v56 = vpack.c.bf16 %v2408_v28, %v2407_v27  ;;  %v2415_v5 = vld [vmem:[%s4944_s7 + $0xd0] sm:$0xff] }
 0x7b5   :  { %v2220_v17 = vadd.f32 %v2216_v47, %v4742_v13  ;;  %v2221_v40 = vadd.f32 %v2217_v4, %v4744_v8  ;;  %v2405_v13 = vld [vmem:[%s4944_s7 + $0x80] sm:$0xff]  ;;  %v2406_v8 = vld [vmem:[%s4944_s7 + $0x88] sm:$0xff] }
 0x7b6   :  { %v3229_v53 = vpack.c.bf16 %v2406_v8, %v2405_v13  ;;  %v2398_v47 = vld [vmem:[%s4944_s7 + $0x48] sm:$0xff] }
 0x7b7   :  { %v2228_v7 = vpop.permute.xlu1 %2227  ;;  %v3247_v4 = vpack.c.bf16 %v2398_v47, %v2397_v45 }
 0x7b8   :  { %v2250_v42 = vmul.f32 %v2243_v33, %v2228_v7  ;;  %v2251_v9 = vmul.f32 %v2247_v35, %v2228_v7  ;;  %3230 = vmatprep.subr.bf16.mxu1 %v3229_v53  ;;  %v2410_v33 = vld [vmem:[%s4944_s7 + $0xa8] sm:$0xff]  ;;  %v3235_v35 = vpack.c.bf16 %v2392_v30, %v2391_v31  ;;  %v2416_v7 = vld [vmem:[%s4944_s7 + $0xd8] sm:$0xff]  ;;  %v2357_v53 = vld [vmem:[%s4945_s5] sm:$0x3]  ;;  %v2378_v30 = vrot.slane %v2373_v54, %v4279_v32 }
 0x7b9   :  { %3232 = vmatpush3.bf16.msra.mxu1 %v3231_v29  ;;  %v3237_v36 = vpack.c.bf16 %v2410_v33, %v2409_v1  ;;  %v2362_v27 = vrot.slane %v2357_v53, %v4279_v32  ;;  %v2366_v28 = vrot.slane %v2357_v53, %v4285_v34  ;;  %v2382_v1 = vrot.slane %v2373_v54, %v4285_v34  ;;  %v2505_v34 = vld [vmem:[%s4947_s9] sm:$0xff] }
 0x7ba   :  { %v2254_v16 = vadd.f32 %v2250_v42, %v2220_v17  ;;  %v2255_v46 = vadd.f32 %v2251_v9, %v2221_v40  ;;  %3234 = vmatprep.subr.bf16.mxu1 %v3233_v56  ;;  %v3249_v17 = vpack.c.bf16 %v2416_v7, %v2415_v5  ;;  %v2399_v40 = vld [vmem:[%s4944_s7 + $0x50] sm:$0xff]  ;;  %v2400_v42 = vld [vmem:[%s4944_s7 + $0x58] sm:$0xff] }
 0x7bb   :  { %v3251_v9 = vpack.c.bf16 %v2400_v42, %v2399_v40  ;;  %v2879_v40 = vld [vmem:[%s4949_s10] ss:$0 sm:$0xff] }
 0x7bc   :  { %v2296_v49 = vpop.permute.xlu1 %2295  ;;  %v2288_v51 = vadd.f32 %v2284_v14, %v2254_v16  ;;  %v2289_v21 = vadd.f32 %v2285_v15, %v2255_v46  ;;  %v2417_v14 = vld [vmem:[%s4944_s7 + $0xe0] sm:$0xff]  ;;  %v2418_v15 = vld [vmem:[%s4944_s7 + $0xe8] sm:$0xff] }
 0x7bd   :  { %v2318_v48 = vmul.f32 %v2311_v55, %v2296_v49  ;;  %v2319_v22 = vmul.f32 %v2315_v57, %v2296_v49  ;;  %3236 = vmatpush3.bf16.msra.mxu1 %v3235_v35  ;;  %v3253_v16 = vpack.c.bf16 %v2418_v15, %v2417_v14  ;;  %v2401_v46 = vld [vmem:[%s4944_s7 + $0x60] sm:$0xff]  ;;  %v2402_v49 = vld [vmem:[%s4944_s7 + $0x68] sm:$0xff] }
 0x7be   :  { %3238 = vmatprep.subr.bf16.mxu1 %v3237_v36 }
 0x7bf   :  { %v2322_v23 = vadd.f32 %v2318_v48, %v2288_v51  ;;  %v2323_v24 = vadd.f32 %v2319_v22, %v2289_v21  ;;  %v3255_v51 = vpack.c.bf16 %v2402_v49, %v2401_v46  ;;  %v2419_v21 = vld [vmem:[%s4944_s7 + $0xf0] sm:$0xff]  ;;  %v2420_v48 = vld [vmem:[%s4944_s7 + $0xf8] sm:$0xff] }
 0x7c0   :  { %v3257_v22 = vpack.c.bf16 %v2420_v48, %v2419_v21 }
 0x7c1   :  { %v2327_v25 = vadd.f32 %v2323_v24, %v2322_v23  ;;  %3240 = vmatpush3.bf16.msra.mxu1 %v3239_v38 }
 0x7c2   :  { %3242 = vmatprep.subr.bf16.mxu1 %v3241_v18  ;;  %v2510_v18 = vld [vmem:[%s4947_s9 + $0x28] sm:$0xff] }
 0x7c3   :  { %2328 = vadd.xlane.f32.xlu1 %v2327_v25  ;;  %v3269_v41 = vpack.c.bf16 %v2510_v18, %v2509_v60 }
 0x7c5   :  { %3244 = vmatpush3.bf16.msra.mxu1 %v3243_v63 }
 0x83d   :  { %v2326_v39 = vpop.xlane.xlu0 %2325 }
 0x83e   :  { %v2331_v10 = vmul.f32 0.00390625, %v2326_v39 }
 0x840   :  { %v4813_v19 = vsub.f32 %v2320_v0, %v2331_v10  ;;  %v4815_v20 = vsub.f32 %v2321_v2, %v2331_v10  ;;  %v2413_v0 = vld [vmem:[%s4944_s7 + $0xc0] sm:$0xff]  ;;  %v2414_v2 = vld [vmem:[%s4944_s7 + $0xc8] sm:$0xff] }
 0x841   :  { %v3245_v3 = vpack.c.bf16 %v2414_v2, %v2413_v0 }
 0x842   :  { %v2337_v43 = vmul.f32 %v4813_v19, %v4813_v19  ;;  %v2338_v52 = vmul.f32 %v4815_v20, %v4815_v20 }
 0x843   :  { %3246 = vmatprep.subr.bf16.mxu1 %v3245_v3 }
 0x844   :  { %v2341_v12 = vadd.f32 %v2338_v52, %v2337_v43  ;;  %3248 = vmatpush3.bf16.msra.mxu1 %v3247_v4 }
 0x845   :  { %3250 = vmatprep.subr.bf16.mxu1 %v3249_v17 }
 0x846   :  { %2342 = vadd.xlane.f32.xlu0 %v2341_v12 }
 0x848   :  { %3252 = vmatpush3.bf16.msra.mxu1 %v3251_v9 }
 0x849   :  { %3254 = vmatprep.subr.bf16.mxu1 %v3253_v16 }
 0x84c   :  { %3256 = vmatpush3.bf16.msra.mxu1 %v3255_v51 }
 0x84d   :  { %3258 = vmatprep.subr.bf16.mxu1 %v3257_v22 }
 0x850   :  { %v2329_v44 = vpop.xlane.xlu1 %2328 }
 0x851   :  { %v2332_v55 = vmul.f32 0.00390625, %v2329_v44  ;;  %v2506_v44 = vld [vmem:[%s4947_s9 + $0x8] sm:$0xff] }
 0x853   :  { %v4821_v57 = vsub.f32 %v2322_v23, %v2332_v55  ;;  %v4823_v58 = vsub.f32 %v2323_v24, %v2332_v55  ;;  %v2403_v23 = vld [vmem:[%s4944_s7 + $0x70] sm:$0xff]  ;;  %v2404_v24 = vld [vmem:[%s4944_s7 + $0x78] sm:$0xff] }
 0x854   :  { %v3259_v25 = vpack.c.bf16 %v2404_v24, %v2403_v23  ;;  %v2507_v55 = vld [vmem:[%s4947_s9 + $0x10] sm:$0xff] }
 0x855   :  { %v2339_v61 = vmul.f32 %v4821_v57, %v4821_v57  ;;  %v2340_v62 = vmul.f32 %v4823_v58, %v4823_v58 }
 0x856   :  { %3260 = vmatpush3.bf16.msra.mxu1 %v3259_v25 }
 0x857   :  { %v2344_v11 = vadd.f32 %v2340_v62, %v2339_v61  ;;  %v2512_v61 = vld [vmem:[%s4947_s9 + $0x38] sm:$0xff] }
 0x858   :  { %v3273_v62 = vpack.c.bf16 %v2512_v61, %v2511_v50 }
 0x859   :  { %2345 = vadd.xlane.f32.xlu0 %v2344_v11  ;;  %v2878_v11 = vld [vmem:[%s4948_s8] ss:$0 sm:$0xff] }
 0x8d3   :  { %v2343_v13 = vpop.xlane.xlu0 %2342 }
 0x8d4   :  { %v2347_v8 = vmul.f32 0.00390625, %v2343_v13 }
 0x8d6   :  { %v2349_v26 = vadd.f32 1e-05, %v2347_v8 }
 0x8d8   :  { %3602 = vrsqrt.f32 %v2349_v26 }
 0x8e2   :  { %v3603_v29 = vpop.eup %3602 }
 0x8e3   :  { %v2353_v56 = vmul.f32 %v3603_v29, %v4813_v19  ;;  %v2354_v31 = vmul.f32 %v3603_v29, %v4815_v20 }
 0x8e5   :  { %v2369_v33 = vmul.f32 %v2362_v27, %v2353_v56  ;;  %v2370_v35 = vmul.f32 %v2366_v28, %v2354_v31 }
 0x8e6   :  { %v2346_v36 = vpop.xlane.xlu0 %2345 }
 0x8e7   :  { %v2348_v37 = vmul.f32 0.00390625, %v2346_v36  ;;  %v2385_v6 = vadd.f32 %v2378_v30, %v2369_v33  ;;  %v2386_v38 = vadd.f32 %v2382_v1, %v2370_v35 }
 0x8e9   :  { %v2350_v39 = vadd.f32 1e-05, %v2348_v37  ;;  %2492 = vmatprep.mubr.f32.mxu1 %v2386_v38 }
 0x8ea   :  { %2493 = vmatmul.mubr.f32.vlgmr.msra.gmra.mrb[20].mxu1 %v2385_v6 }
 0x8eb   :  { %3604 = vrsqrt.f32 %v2350_v39 }
 0x8f5   :  { %v3605_v10 = vpop.eup %3604 }
 0x8f6   :  { %v2356_v43 = vmul.f32 %v3605_v10, %v4823_v58  ;;  %v2355_v19 = vmul.f32 %v3605_v10, %v4821_v57  ;;  %v3261_v58 = vpack.c.bf16 %v2506_v44, %v2505_v34  ;;  %v2508_v57 = vld [vmem:[%s4947_s9 + $0x18] sm:$0xff] }
 0x8f7   :  { %v3265_v59 = vpack.c.bf16 %v2508_v57, %v2507_v55 }
 0x8f8   :  { %v2372_v20 = vmul.f32 %v2366_v28, %v2356_v43  ;;  %v2371_v52 = vmul.f32 %v2362_v27, %v2355_v19  ;;  %3262 = vmatprep.subr.bf16.mxu1 %v3261_v58 }
 0x8f9   :  { %3264 = vmatpush3.bf16.msra.mxu1 %v3261_v58 }
 0x8fa   :  { %v2388_v32 = vadd.f32 %v2382_v1, %v2372_v20  ;;  %v2387_v12 = vadd.f32 %v2378_v30, %v2371_v52  ;;  %3266 = vmatprep.subr.bf16.mxu1 %v3265_v59 }
 0x8fc   :  { %2497 = vmatprep.mubr.f32.mxu1 %v2388_v32 }
 0x8fd   :  { %2498 = vmatmul.mubr.f32.gmra.mrb[22].mxu1 %v2387_v12 }
 0x8fe   :  { %3268 = vmatpush3.bf16.msra.mxu1 %v3265_v59 }
 0x8ff   :  { %3270 = vmatprep.subr.bf16.mxu1 %v3269_v41 }
 0x902   :  { %3272 = vmatpush3.bf16.msra.mxu1 %v3269_v41 }
 0x903   :  { %3274 = vmatprep.subr.bf16.mxu1 %v3273_v62 }
 0x906   :  { %3276 = vmatpush3.bf16.msra.mxu1 %v3273_v62 }
 0x9bd   :  { %v3066_v63 = vpop.f32.mrb[20].mxu1 }
 0x9be   :  { %v3067_v0 = vpop.f32.mrb[21].mxu1 }
 0x9bf   :  { %v3068_v2 = vadd.f32 %v3067_v0, %v3066_v63 }
 0x9c1   :  { %v2495_v3 = vadd.f32 %v3068_v2, %v2878_v11 }
 0x9c3   :  { %v2503_v45 = vmax.f32 %v2495_v3, 0.0 }
 0x9c5   :  { %3098 = vmatprep.mubr.msk.f32.mxu1 %vm2520_vm0, %v2503_v45 }
 0x9d0   :  { %v3069_v47 = vpop.f32.mrb[22].mxu1 }
 0x9d1   :  { %v3070_v4 = vpop.f32.mrb[23].mxu1 }
 0x9d2   :  { %v3071_v5 = vadd.f32 %v3070_v4, %v3069_v47 }
 0x9d4   :  { %v2500_v7 = vadd.f32 %v3071_v5, %v2878_v11 }
 0x9d6   :  { %v2504_v17 = vmax.f32 %v2500_v7, 0.0 }
 0x9d8   :  { %3099 = vmatmul.mubr.msk.f32.vlgmr.msra.gmra.mrb[24].mxu1 %vm2520_vm0, %v2504_v17 }
 0xaab   :  { %v3100_v42 = vpop.f32.mrb[24].mxu1 }
 0xaac   :  { %v2599_v9 = vadd.f32 %v3100_v42, %v2879_v40  ;;  %v2593_v14 = vpop.f32.mrb[25].mxu1 }
 0xaad   :  { %v2594_v15 = vadd.f32 %v2879_v40, %v2593_v14 }
 0xaae   :  { %2604 = vst.msk [vmem:[%s4950_s11 + $0x8] sm:$0xff] %vm2602_vm1, %v2599_v9 }
 0xaaf   :  { %2603 = vst.msk [vmem:[%s4950_s11] sm:$0xff] %vm2602_vm1, %v2594_v15 }

</bundles_post_ra>
